<compile_context>
chip_gen: v7x
topology: tpu7x:2x2x1
jax: 0.10.0
libtpu: 0.0.40
codegen_flags: <defaults>
</compile_context>

<pallas_src>
import jax
import jax.numpy as jnp
from jax.experimental import pallas as pl
from jax.experimental.pallas import tpu as pltpu

KER = 8  # 'ker' in the PyTorch module


# ----------------------------- in-kernel math helpers -----------------------------

def _erf(x):
    # Abramowitz & Stegun 7.1.26 rational approximation (|err| <= 1.5e-7), matches
    # torch.erf to f32 precision. Uses only mul/add/exp/select (Pallas-safe).
    a1, a2, a3, a4, a5 = (0.254829592, -0.284496736, 1.421413741,
                          -1.453152027, 1.061405429)
    p = 0.3275911
    s = jnp.where(x < 0.0, -1.0, 1.0)
    ax = x * s
    t = 1.0 / (1.0 + p * ax)
    poly = ((((a5 * t + a4) * t + a3) * t + a2) * t + a1) * t
    return s * (1.0 - poly * jnp.exp(-ax * ax))


def _gelu(x):
    # Exact (erf-based) GELU, same as torch.nn.GELU() default. Runs on f32.
    return 0.5 * x * (1.0 + _erf(x * 0.7071067811865476))


# ----------------------------------- kernels --------------------------------------

def _fused_conv_gelu_kernel(x_ref, w_ref, b_ref, o_ref):
    # Fused 3x3 conv (as im2col matmul) + bias + GELU for all three encoders.
    # x_ref: (1, 9*Cin, HW) bf16 ; w_ref: (3*Cout, 9*Cin) bf16 ; b_ref: (3*Cout, 1) f32
    # o_ref: (1, 3*Cout, HW) bf16  -- lane-dense (HW on lanes)
    y = jnp.dot(w_ref[...], x_ref[0], preferred_element_type=jnp.float32)
    y = y + b_ref[...]
    o_ref[0] = _gelu(y).astype(o_ref.dtype)


def _attn_kernel(q_ref, k_ref, v_ref, m_ref, w_ref, o_ref):
    # Scaled-dot-product attention with the fc_q/fc_k projections algebraically
    # folded into m_ref / w_ref (see header).  One batch element per grid step.
    # q/k/v_ref: (1, L, P) bf16 ; m_ref: (P, P) bf16 ; w_ref: (1, P) f32
    # o_ref: (1, L, P) bf16
    qm = jnp.dot(q_ref[0], m_ref[...], preferred_element_type=jnp.float32)    # (L, P)
    s = jax.lax.dot_general(qm.astype(k_ref.dtype), k_ref[0],
                            (((1,), (1,)), ((), ())),
                            preferred_element_type=jnp.float32)               # (L, L)
    kw = jax.lax.dot_general(w_ref[...], k_ref[0].astype(jnp.float32),
                             (((1,), (1,)), ((), ())),
                             preferred_element_type=jnp.float32)              # (1, L)
    s = s + kw                                         # broadcast over query rows
    # softmax over keys (row-constant terms already cancelled analytically)
    s = s - jnp.max(s, axis=-1, keepdims=True)
    p = jnp.exp(s)
    p = p * pl.reciprocal(jnp.sum(p, axis=-1, keepdims=True), approx=True)
    o_ref[0] = jnp.dot(p.astype(v_ref.dtype), v_ref[0],
                       preferred_element_type=jnp.float32).astype(o_ref.dtype)


def _ff_residual_kernel(x_ref, w1_ref, b1_ref, w2_ref, b2_ref, r_ref, o_ref):
    # FeedForward (two 1x1 convs): gelu(W1@x+b1) -> gelu(W2@h+b2) -> + residual.
    # Channel-first (lane-dense): x_ref (1, C, HW) bf16 ; w1 (4C, C) bf16 ; b1 (4C,1) f32
    # w2 (C, 4C) bf16 ; b2 (C,1) f32 ; r_ref (1, C, HW) f32 ; o_ref (1, C, HW) f32
    h = _gelu(jnp.dot(w1_ref[...], x_ref[0],
                      preferred_element_type=jnp.float32) + b1_ref[...])
    y = _gelu(jnp.dot(w2_ref[...], h.astype(w2_ref.dtype),
                      preferred_element_type=jnp.float32) + b2_ref[...])
    o_ref[0] = (y + r_ref[0]).astype(o_ref.dtype)


# --------------------------------- unfold / fold (glue) ----------------------------

def unfold_cf(x, k):
    # == F.unfold(NCHW, kernel=(k,k), stride=k).transpose(1,2): cols ordered (c,kh,kw)
    B, C, H, W = x.shape
    nH, nW = H // k, W // k
    x = x.reshape(B, C, nH, k, nW, k)
    x = x.transpose(0, 2, 4, 1, 3, 5)            # (B, nH, nW, C, kh, kw)
    return x.reshape(B, nH * nW, C * k * k)


def fold_cf(x, H, W, C, k):
    # inverse of unfold_cf for non-overlapping patches -> NCHW
    B, L, _ = x.shape
    nH, nW = H // k, W // k
    x = x.reshape(B, nH, nW, C, k, k)
    x = x.transpose(0, 3, 1, 4, 2, 5)            # (B, C, nH, kh, nW, kw)
    return x.reshape(B, C, H, W)


# --------------------------------- parameters ---------------------------------------

def init_params(key, ind):
    P = KER * KER * ind
    ks = jax.random.split(key, 12)

    def nrm(k, shape, scale=0.05):
        return (scale * jax.random.normal(k, shape)).astype(jnp.float32)

    return dict(
        # conv weights stored (kh, kw, Cin, Cout); biases (Cout,)
        enc_w=nrm(ks[0], (3, 3, ind, ind)),   enc_b=nrm(ks[1], (ind,)),
        enck_w=nrm(ks[2], (3, 3, ind, ind)),  enck_b=nrm(ks[3], (ind,)),
        encv_w=nrm(ks[4], (3, 3, ind, ind)),  encv_b=nrm(ks[5], (ind,)),
        fcq_w=nrm(ks[6], (P, 1024)),          fcq_b=nrm(ks[7], (1024,)),
        fck_w=nrm(ks[8], (P, 1024)),          fck_b=nrm(ks[9], (1024,)),
        # BatchNorm1d (eval mode): default torch init (gamma=1, beta=0, rm=0, rv=1)
        bnq_g=jnp.ones((1024,), jnp.float32), bnq_b=jnp.zeros((1024,), jnp.float32),
        bnq_rm=jnp.zeros((1024,), jnp.float32), bnq_rv=jnp.ones((1024,), jnp.float32),
        bnk_g=jnp.ones((1024,), jnp.float32), bnk_b=jnp.zeros((1024,), jnp.float32),
        bnk_rm=jnp.zeros((1024,), jnp.float32), bnk_rv=jnp.ones((1024,), jnp.float32),
        # 1x1 conv weights stored (Cout, Cin) (PyTorch conv weight squeezed)
        ff1_w=nrm(ks[10], (4 * ind, ind)),    ff1_b=jnp.zeros((4 * ind,), jnp.float32),
        ff2_w=nrm(ks[11], (ind, 4 * ind)),    ff2_b=jnp.zeros((ind,), jnp.float32),
    )


def prepare_params(p):
    """Fuse the three conv weights, fold BN + 1/sqrt(D) + fc_q/fc_k into the
    composite attention operands M and w, transpose for channel-first matmuls,
    cast MXU operands to bf16."""
    C = p["enc_b"].shape[0]
    D = p["fcq_w"].shape[1]

    def conv_wt(w):  # (3,3,Cin,Cout) -> (Cout, 9*Cin), col order (kh, kw, ci)
        cin, cout = w.shape[2], w.shape[3]
        return w.reshape(9 * cin, cout).T

    conv_wT = jnp.concatenate(
        [conv_wt(p["enc_w"]), conv_wt(p["enck_w"]), conv_wt(p["encv_w"])],
        axis=0).astype(jnp.bfloat16)                                   # (3C, 9C)
    conv_b = jnp.concatenate(
        [p["enc_b"], p["enck_b"], p["encv_b"]], axis=0).reshape(3 * C, 1)

    # BatchNorm1d (eval) folded into the fc weights/biases (f32).
    sq = p["bnq_g"] * jax.lax.rsqrt(p["bnq_rv"] + 1e-5)
    sk = p["bnk_g"] * jax.lax.rsqrt(p["bnk_rv"] + 1e-5)
    wq_bn = p["fcq_w"] * sq[None, :]                                   # (P, D)
    bq_bn = (p["fcq_b"] - p["bnq_rm"]) * sq + p["bnq_b"]               # (D,)
    wk_bn = p["fck_w"] * sk[None, :]                                   # (P, D)
    # NOTE: bk_bn only enters score terms constant along the key axis -> cancels
    #       in softmax, so it never needs to be computed.

    scale = 1.0 / (float(D) ** 0.5)
    attn_M = ((wq_bn @ wk_bn.T) * scale).astype(jnp.bfloat16)          # (P, P)
    attn_w = ((wk_bn @ bq_bn) * scale).reshape(1, -1)                  # (1, P) f32

    return dict(
        conv_wT=conv_wT, conv_b=conv_b,
        attn_M=attn_M, attn_w=attn_w,
        ff1_w=p["ff1_w"].astype(jnp.bfloat16), ff1_b=p["ff1_b"].reshape(-1, 1),
        ff2_w=p["ff2_w"].astype(jnp.bfloat16), ff2_b=p["ff2_b"].reshape(-1, 1),
    )


# ----------------------------------- forward ----------------------------------------

def search_transfer2_forward(feat, prep):
    # feat: (B, ind, H, W) NCHW, H and W divisible by KER
    B, C, H, W = feat.shape
    HW = H * W

    # --- im2col (channel-first, bf16, built ONCE, shared by all three fused convs) ---
    xb = feat.astype(jnp.bfloat16)
    xpad = jnp.pad(xb, ((0, 0), (0, 0), (1, 1), (1, 1)))
    cols = [xpad[:, :, dy:dy + H, dx:dx + W] for dy in range(3) for dx in range(3)]
    xcol = jnp.concatenate(cols, axis=1).reshape(B, 9 * C, HW)

    # --- fused encoder / encoder1_k / encoder1_v : one conv matmul, Cout = 3*C ---
    conv_out = pl.pallas_call(
        _fused_conv_gelu_kernel,
        out_shape=jax.ShapeDtypeStruct((B, 3 * C, HW), jnp.bfloat16),
        grid=(B,),
        in_specs=[
            pl.BlockSpec((1, 9 * C, HW), lambda i: (i, 0, 0)),
            pl.BlockSpec((3 * C, 9 * C), lambda i: (0, 0)),
            pl.BlockSpec((3 * C, 1), lambda i: (0, 0)),
        ],
        out_specs=pl.BlockSpec((1, 3 * C, HW), lambda i: (i, 0, 0)),
        compiler_params=pltpu.CompilerParams(dimension_semantics=("parallel",)),
    )(xcol, prep["conv_wT"], prep["conv_b"])

    conv_out = conv_out.reshape(B, 3 * C, H, W)
    refer = conv_out[:, :C]          # encoder
    feat_k = conv_out[:, C:2 * C]    # encoder1_k
    feat_v = conv_out[:, 2 * C:]     # encoder1_v

    # --- unfold (non-overlapping ker x ker patches), F.unfold column order ---
    q_un = unfold_cf(refer, KER)     # (B, L, P) bf16
    k_un = unfold_cf(feat_k, KER)
    v_un = unfold_cf(feat_v, KER)
    L, P = q_un.shape[1], q_un.shape[2]

    # --- attention with fc_q/fc_k + BN + 1/sqrt(D) folded into M, w (per batch) ---
    attn_out = pl.pallas_call(
        _attn_kernel,
        out_shape=jax.ShapeDtypeStruct((B, L, P), jnp.bfloat16),
        grid=(B,),
        in_specs=[
            pl.BlockSpec((1, L, P), lambda i: (i, 0, 0)),
            pl.BlockSpec((1, L, P), lambda i: (i, 0, 0)),
            pl.BlockSpec((1, L, P), lambda i: (i, 0, 0)),
            pl.BlockSpec((P, P), lambda i: (0, 0)),
            pl.BlockSpec((1, P), lambda i: (0, 0)),
        ],
        out_specs=pl.BlockSpec((1, L, P), lambda i: (i, 0, 0)),
        compiler_params=pltpu.CompilerParams(dimension_semantics=("parallel",)),
    )(q_un, k_un, v_un, prep["attn_M"], prep["attn_w"])

    # --- fold back to feature map (exact inverse of the non-overlapping unfold) ---
    x_ff = fold_cf(attn_out, H, W, C, KER).reshape(B, C, HW)     # (B, C, HW) bf16

    # --- FeedForward (two 1x1 convs + GELU) + residual add, channel-first ---
    out = pl.pallas_call(
        _ff_residual_kernel,
        out_shape=jax.ShapeDtypeStruct((B, C, HW), jnp.float32),
        grid=(B,),
        in_specs=[
            pl.BlockSpec((1, C, HW), lambda i: (i, 0, 0)),
            pl.BlockSpec((4 * C, C), lambda i: (0, 0)),
            pl.BlockSpec((4 * C, 1), lambda i: (0, 0)),
            pl.BlockSpec((C, 4 * C), lambda i: (0, 0)),
            pl.BlockSpec((C, 1), lambda i: (0, 0)),
            pl.BlockSpec((1, C, HW), lambda i: (i, 0, 0)),
        ],
        out_specs=pl.BlockSpec((1, C, HW), lambda i: (i, 0, 0)),
        compiler_params=pltpu.CompilerParams(dimension_semantics=("parallel",)),
    )(x_ff, prep["ff1_w"], prep["ff1_b"], prep["ff2_w"], prep["ff2_b"],
      feat.reshape(B, C, HW))

    return out.reshape(B, C, H, W)       # already NCHW — no final transpose needed


# ----------------------------------------- main -------------------------------------

if __name__ == "__main__":
    key = jax.random.PRNGKey(0)
    k_in, k_par = jax.random.split(key)
    B, IND, H, W = 2, 4, 16, 16                      # L = (H/8)*(W/8) = 4, P = 256
    feat = jax.random.normal(k_in, (B, IND, H, W), dtype=jnp.float32)

    raw_params = init_params(k_par, IND)
    prep = prepare_params(raw_params)                # BN/scale/fc folding, conv fusion, bf16

    out = jax.jit(search_transfer2_forward)(feat, prep)
    out = jax.block_until_ready(out)
    assert out.shape == (B, IND, H, W), out.shape
    assert out.dtype == jnp.float32
    print("KERNEL_OK")
</pallas_src>

<mosaic_0001>
module attributes {stable_mosaic.version = 11 : i64} {
  func.func @_attn_kernel(%arg0: i32, %arg1: memref<1x4x256xbf16, #tpu.memory_space<vmem>>, %arg2: memref<1x4x256xbf16, #tpu.memory_space<vmem>>, %arg3: memref<1x4x256xbf16, #tpu.memory_space<vmem>>, %arg4: memref<256x256xbf16, #tpu.memory_space<vmem>>, %arg5: memref<1x256xf32, #tpu.memory_space<vmem>>, %arg6: memref<1x4x256xbf16, #tpu.memory_space<vmem>>) attributes {dimension_semantics = [#tpu.dimension_semantics<parallel>], iteration_bounds = array<i64: 2>, scalar_prefetch = 0 : i64, scratch_operands = 0 : i64, tpu.core_type = #tpu.core_type<tc>, window_params = [{transform_indices = @transform_0, window_bounds = array<i64: 1, 4, 256>}, {transform_indices = @transform_1, window_bounds = array<i64: 1, 4, 256>}, {transform_indices = @transform_2, window_bounds = array<i64: 1, 4, 256>}, {pipeline_mode = #tpu.pipeline_mode<synchronous>, transform_indices = @transform_3, window_bounds = array<i64: 256, 256>}, {pipeline_mode = #tpu.pipeline_mode<synchronous>, transform_indices = @transform_4, window_bounds = array<i64: 1, 256>}, {transform_indices = @transform_5, window_bounds = array<i64: 1, 4, 256>}]} {
    %c0 = arith.constant 0 : index
    %c0_0 = arith.constant 0 : index
    %c0_1 = arith.constant 0 : index
    %0 = vector.load %arg1[%c0, %c0_0, %c0_1] : memref<1x4x256xbf16, #tpu.memory_space<vmem>>, vector<1x4x256xbf16>
    %1 = vector.shape_cast %0 : vector<1x4x256xbf16> to vector<4x256xbf16>
    %c0_2 = arith.constant 0 : index
    %c0_3 = arith.constant 0 : index
    %2 = vector.load %arg4[%c0_2, %c0_3] : memref<256x256xbf16, #tpu.memory_space<vmem>>, vector<256x256xbf16>
    %cst = arith.constant dense<0.000000e+00> : vector<4x256xf32>
    %3 = tpu.matmul %1, %2, %cst {dimension_numbers = #tpu.dot_dimension_numbers<[1], [0], [0], [1], [0, 0, 1, 1], [], []>} : vector<4x256xbf16>, vector<256x256xbf16>, vector<4x256xf32> -> vector<4x256xf32>
    %4 = arith.truncf %3 : vector<4x256xf32> to vector<4x256xbf16>
    %c0_4 = arith.constant 0 : index
    %c0_5 = arith.constant 0 : index
    %c0_6 = arith.constant 0 : index
    %5 = vector.load %arg2[%c0_4, %c0_5, %c0_6] : memref<1x4x256xbf16, #tpu.memory_space<vmem>>, vector<1x4x256xbf16>
    %6 = vector.shape_cast %5 : vector<1x4x256xbf16> to vector<4x256xbf16>
    %cst_7 = arith.constant dense<0.000000e+00> : vector<4x4xf32>
    %7 = tpu.matmul %4, %6, %cst_7 {dimension_numbers = #tpu.dot_dimension_numbers<[1], [1], [0], [0], [0, 0, 1, 0], [], []>} : vector<4x256xbf16>, vector<4x256xbf16>, vector<4x4xf32> -> vector<4x4xf32>
    %c0_8 = arith.constant 0 : index
    %c0_9 = arith.constant 0 : index
    %8 = vector.load %arg5[%c0_8, %c0_9] : memref<1x256xf32, #tpu.memory_space<vmem>>, vector<1x256xf32>
    %c0_10 = arith.constant 0 : index
    %c0_11 = arith.constant 0 : index
    %c0_12 = arith.constant 0 : index
    %9 = vector.load %arg2[%c0_10, %c0_11, %c0_12] : memref<1x4x256xbf16, #tpu.memory_space<vmem>>, vector<1x4x256xbf16>
    %10 = vector.shape_cast %9 : vector<1x4x256xbf16> to vector<4x256xbf16>
    %11 = arith.extf %10 : vector<4x256xbf16> to vector<4x256xf32>
    %cst_13 = arith.constant dense<0.000000e+00> : vector<1x4xf32>
    %12 = tpu.matmul %8, %11, %cst_13 {dimension_numbers = #tpu.dot_dimension_numbers<[1], [1], [0], [0], [0, 0, 1, 0], [], []>} : vector<1x256xf32>, vector<4x256xf32>, vector<1x4xf32> -> vector<1x4xf32>
    %13 = vector.broadcast %12 : vector<1x4xf32> to vector<4x4xf32>
    %14 = arith.addf %7, %13 : vector<4x4xf32>
    %cst_14 = arith.constant dense<0xFF800000> : vector<4xf32>
    %15 = vector.multi_reduction <maximumf>, %14, %cst_14 [1] : vector<4x4xf32> to vector<4xf32>
    %16 = vector.shape_cast %15 : vector<4xf32> to vector<4x1xf32>
    %17 = vector.broadcast %16 : vector<4x1xf32> to vector<4x4xf32>
    %18 = arith.subf %14, %17 : vector<4x4xf32>
    %19 = math.exp %18 : vector<4x4xf32>
    %cst_15 = arith.constant dense<0.000000e+00> : vector<4xf32>
    %20 = vector.multi_reduction <add>, %19, %cst_15 [1] : vector<4x4xf32> to vector<4xf32>
    %21 = vector.shape_cast %20 : vector<4xf32> to vector<4x1xf32>
    %22 = tpu.reciprocal %21 {approx = true} : vector<4x1xf32> -> vector<4x1xf32>
    %23 = vector.broadcast %22 : vector<4x1xf32> to vector<4x4xf32>
    %24 = arith.mulf %19, %23 : vector<4x4xf32>
    %25 = arith.truncf %24 : vector<4x4xf32> to vector<4x4xbf16>
    %c0_16 = arith.constant 0 : index
    %c0_17 = arith.constant 0 : index
    %c0_18 = arith.constant 0 : index
    %26 = vector.load %arg3[%c0_16, %c0_17, %c0_18] : memref<1x4x256xbf16, #tpu.memory_space<vmem>>, vector<1x4x256xbf16>
    %27 = vector.shape_cast %26 : vector<1x4x256xbf16> to vector<4x256xbf16>
    %cst_19 = arith.constant dense<0.000000e+00> : vector<4x256xf32>
    %28 = tpu.matmul %25, %27, %cst_19 {dimension_numbers = #tpu.dot_dimension_numbers<[1], [0], [0], [1], [0, 0, 1, 1], [], []>} : vector<4x4xbf16>, vector<4x256xbf16>, vector<4x256xf32> -> vector<4x256xf32>
    %29 = arith.truncf %28 : vector<4x256xf32> to vector<4x256xbf16>
    %c0_20 = arith.constant 0 : index
    %c0_21 = arith.constant 0 : index
    %c0_22 = arith.constant 0 : index
    %30 = vector.load %arg6[%c0_20, %c0_21, %c0_22] : memref<1x4x256xbf16, #tpu.memory_space<vmem>>, vector<1x4x256xbf16>
    %31 = vector.shape_cast %30 : vector<1x4x256xbf16> to vector<4x256xbf16>
    %32 = vector.shape_cast %29 : vector<4x256xbf16> to vector<1x4x256xbf16>
    tpu.vector_store %arg6[%c0_20, %c0_21, %c0_22], %32 {strides = array<i32>} : memref<1x4x256xbf16, #tpu.memory_space<vmem>>, vector<1x4x256xbf16>,
    return
  }
  func.func @transform_0(%arg0: i32) -> (i32, i32, i32) {
    %c0_i32 = arith.constant 0 : i32
    %c0_i32_0 = arith.constant 0 : i32
    %c0_i32_1 = arith.constant 0 : i32
    return %arg0, %c0_i32, %c0_i32_0 : i32, i32, i32
  }
  func.func @transform_1(%arg0: i32) -> (i32, i32, i32) {
    %c0_i32 = arith.constant 0 : i32
    %c0_i32_0 = arith.constant 0 : i32
    %c0_i32_1 = arith.constant 0 : i32
    return %arg0, %c0_i32, %c0_i32_0 : i32, i32, i32
  }
  func.func @transform_2(%arg0: i32) -> (i32, i32, i32) {
    %c0_i32 = arith.constant 0 : i32
    %c0_i32_0 = arith.constant 0 : i32
    %c0_i32_1 = arith.constant 0 : i32
    return %arg0, %c0_i32, %c0_i32_0 : i32, i32, i32
  }
  func.func @transform_3(%arg0: i32) -> (i32, i32) {
    %c0_i32 = arith.constant 0 : i32
    %c0_i32_0 = arith.constant 0 : i32
    %c0_i32_1 = arith.constant 0 : i32
    return %c0_i32, %c0_i32_0 : i32, i32
  }
  func.func @transform_4(%arg0: i32) -> (i32, i32) {
    %c0_i32 = arith.constant 0 : i32
    %c0_i32_0 = arith.constant 0 : i32
    %c0_i32_1 = arith.constant 0 : i32
    return %c0_i32, %c0_i32_0 : i32, i32
  }
  func.func @transform_5(%arg0: i32) -> (i32, i32, i32) {
    %c0_i32 = arith.constant 0 : i32
    %c0_i32_0 = arith.constant 0 : i32
    %c0_i32_1 = arith.constant 0 : i32
    return %arg0, %c0_i32, %c0_i32_0 : i32, i32, i32
  }
}

module attributes {stable_mosaic.version = 11 : i64} {
  func.func @_fused_conv_gelu_kernel(%arg0: i32, %arg1: memref<1x36x256xbf16, #tpu.memory_space<vmem>>, %arg2: memref<12x36xbf16, #tpu.memory_space<vmem>>, %arg3: memref<12x1xf32, #tpu.memory_space<vmem>>, %arg4: memref<1x12x256xbf16, #tpu.memory_space<vmem>>) attributes {dimension_semantics = [#tpu.dimension_semantics<parallel>], iteration_bounds = array<i64: 2>, scalar_prefetch = 0 : i64, scratch_operands = 0 : i64, tpu.core_type = #tpu.core_type<tc>, window_params = [{transform_indices = @transform_0, window_bounds = array<i64: 1, 36, 256>}, {pipeline_mode = #tpu.pipeline_mode<synchronous>, transform_indices = @transform_1, window_bounds = array<i64: 12, 36>}, {pipeline_mode = #tpu.pipeline_mode<synchronous>, transform_indices = @transform_2, window_bounds = array<i64: 12, 1>}, {transform_indices = @transform_3, window_bounds = array<i64: 1, 12, 256>}]} {
    %c0 = arith.constant 0 : index
    %c0_0 = arith.constant 0 : index
    %0 = vector.load %arg2[%c0, %c0_0] : memref<12x36xbf16, #tpu.memory_space<vmem>>, vector<12x36xbf16>
    %c0_1 = arith.constant 0 : index
    %c0_2 = arith.constant 0 : index
    %c0_3 = arith.constant 0 : index
    %1 = vector.load %arg1[%c0_1, %c0_2, %c0_3] : memref<1x36x256xbf16, #tpu.memory_space<vmem>>, vector<1x36x256xbf16>
    %2 = vector.shape_cast %1 : vector<1x36x256xbf16> to vector<36x256xbf16>
    %cst = arith.constant dense<0.000000e+00> : vector<12x256xf32>
    %3 = tpu.matmul %0, %2, %cst {dimension_numbers = #tpu.dot_dimension_numbers<[1], [0], [0], [1], [0, 0, 1, 1], [], []>} : vector<12x36xbf16>, vector<36x256xbf16>, vector<12x256xf32> -> vector<12x256xf32>
    %c0_4 = arith.constant 0 : index
    %c0_5 = arith.constant 0 : index
    %4 = vector.load %arg3[%c0_4, %c0_5] : memref<12x1xf32, #tpu.memory_space<vmem>>, vector<12x1xf32>
    %5 = vector.broadcast %4 : vector<12x1xf32> to vector<12x256xf32>
    %6 = arith.addf %3, %5 : vector<12x256xf32>
    %cst_6 = arith.constant 5.000000e-01 : f32
    %7 = vector.broadcast %cst_6 : f32 to vector<12x256xf32>
    %8 = arith.mulf %7, %6 : vector<12x256xf32>
    %cst_7 = arith.constant 0.707106769 : f32
    %9 = vector.broadcast %cst_7 : f32 to vector<12x256xf32>
    %10 = arith.mulf %6, %9 : vector<12x256xf32>
    %cst_8 = arith.constant 0.000000e+00 : f32
    %11 = vector.broadcast %cst_8 : f32 to vector<12x256xf32>
    %12 = arith.cmpf olt, %10, %11 : vector<12x256xf32>
    %cst_9 = arith.constant -1.000000e+00 : f32
    %cst_10 = arith.constant 1.000000e+00 : f32
    %13 = vector.broadcast %cst_9 : f32 to vector<12x256xf32>
    %14 = vector.broadcast %cst_10 : f32 to vector<12x256xf32>
    %15 = arith.select %12, %13, %14 : vector<12x256xi1>, vector<12x256xf32>
    %16 = arith.mulf %10, %15 : vector<12x256xf32>
    %cst_11 = arith.constant 0.327591091 : f32
    %17 = vector.broadcast %cst_11 : f32 to vector<12x256xf32>
    %18 = arith.mulf %17, %16 : vector<12x256xf32>
    %cst_12 = arith.constant 1.000000e+00 : f32
    %19 = vector.broadcast %cst_12 : f32 to vector<12x256xf32>
    %20 = arith.addf %19, %18 : vector<12x256xf32>
    %cst_13 = arith.constant 1.000000e+00 : f32
    %21 = vector.broadcast %cst_13 : f32 to vector<12x256xf32>
    %22 = arith.divf %21, %20 : vector<12x256xf32>
    %cst_14 = arith.constant 1.06140542 : f32
    %23 = vector.broadcast %cst_14 : f32 to vector<12x256xf32>
    %24 = arith.mulf %23, %22 : vector<12x256xf32>
    %cst_15 = arith.constant -1.45315206 : f32
    %25 = vector.broadcast %cst_15 : f32 to vector<12x256xf32>
    %26 = arith.addf %24, %25 : vector<12x256xf32>
    %27 = arith.mulf %26, %22 : vector<12x256xf32>
    %cst_16 = arith.constant 1.42141378 : f32
    %28 = vector.broadcast %cst_16 : f32 to vector<12x256xf32>
    %29 = arith.addf %27, %28 : vector<12x256xf32>
    %30 = arith.mulf %29, %22 : vector<12x256xf32>
    %cst_17 = arith.constant -0.284496725 : f32
    %31 = vector.broadcast %cst_17 : f32 to vector<12x256xf32>
    %32 = arith.addf %30, %31 : vector<12x256xf32>
    %33 = arith.mulf %32, %22 : vector<12x256xf32>
    %cst_18 = arith.constant 0.254829586 : f32
    %34 = vector.broadcast %cst_18 : f32 to vector<12x256xf32>
    %35 = arith.addf %33, %34 : vector<12x256xf32>
    %36 = arith.mulf %35, %22 : vector<12x256xf32>
    %cst_19 = arith.constant 0.000000e+00 : f32
    %37 = vector.broadcast %cst_19 : f32 to vector<12x256xf32>
    %38 = arith.subf %37, %16 : vector<12x256xf32>
    %39 = arith.mulf %38, %16 : vector<12x256xf32>
    %40 = math.exp %39 : vector<12x256xf32>
    %41 = arith.mulf %36, %40 : vector<12x256xf32>
    %cst_20 = arith.constant 1.000000e+00 : f32
    %42 = vector.broadcast %cst_20 : f32 to vector<12x256xf32>
    %43 = arith.subf %42, %41 : vector<12x256xf32>
    %44 = arith.mulf %15, %43 : vector<12x256xf32>
    %cst_21 = arith.constant 1.000000e+00 : f32
    %45 = vector.broadcast %cst_21 : f32 to vector<12x256xf32>
    %46 = arith.addf %45, %44 : vector<12x256xf32>
    %47 = arith.mulf %8, %46 : vector<12x256xf32>
    %48 = arith.truncf %47 : vector<12x256xf32> to vector<12x256xbf16>
    %c0_22 = arith.constant 0 : index
    %c0_23 = arith.constant 0 : index
    %c0_24 = arith.constant 0 : index
    %49 = vector.load %arg4[%c0_22, %c0_23, %c0_24] : memref<1x12x256xbf16, #tpu.memory_space<vmem>>, vector<1x12x256xbf16>
    %50 = vector.shape_cast %49 : vector<1x12x256xbf16> to vector<12x256xbf16>
    %51 = vector.shape_cast %48 : vector<12x256xbf16> to vector<1x12x256xbf16>
    tpu.vector_store %arg4[%c0_22, %c0_23, %c0_24], %51 {strides = array<i32>} : memref<1x12x256xbf16, #tpu.memory_space<vmem>>, vector<1x12x256xbf16>,
    return
  }
  func.func @transform_0(%arg0: i32) -> (i32, i32, i32) {
    %c0_i32 = arith.constant 0 : i32
    %c0_i32_0 = arith.constant 0 : i32
    %c0_i32_1 = arith.constant 0 : i32
    return %arg0, %c0_i32, %c0_i32_0 : i32, i32, i32
  }
  func.func @transform_1(%arg0: i32) -> (i32, i32) {
    %c0_i32 = arith.constant 0 : i32
    %c0_i32_0 = arith.constant 0 : i32
    %c0_i32_1 = arith.constant 0 : i32
    return %c0_i32, %c0_i32_0 : i32, i32
  }
  func.func @transform_2(%arg0: i32) -> (i32, i32) {
    %c0_i32 = arith.constant 0 : i32
    %c0_i32_0 = arith.constant 0 : i32
    %c0_i32_1 = arith.constant 0 : i32
    return %c0_i32, %c0_i32_0 : i32, i32
  }
  func.func @transform_3(%arg0: i32) -> (i32, i32, i32) {
    %c0_i32 = arith.constant 0 : i32
    %c0_i32_0 = arith.constant 0 : i32
    %c0_i32_1 = arith.constant 0 : i32
    return %arg0, %c0_i32, %c0_i32_0 : i32, i32, i32
  }
}

module attributes {stable_mosaic.version = 11 : i64} {
  func.func @_ff_residual_kernel(%arg0: i32, %arg1: memref<1x4x256xbf16, #tpu.memory_space<vmem>>, %arg2: memref<16x4xbf16, #tpu.memory_space<vmem>>, %arg3: memref<16x1xf32, #tpu.memory_space<vmem>>, %arg4: memref<4x16xbf16, #tpu.memory_space<vmem>>, %arg5: memref<4x1xf32, #tpu.memory_space<vmem>>, %arg6: memref<1x4x256xf32, #tpu.memory_space<vmem>>, %arg7: memref<1x4x256xf32, #tpu.memory_space<vmem>>) attributes {dimension_semantics = [#tpu.dimension_semantics<parallel>], iteration_bounds = array<i64: 2>, scalar_prefetch = 0 : i64, scratch_operands = 0 : i64, tpu.core_type = #tpu.core_type<tc>, window_params = [{transform_indices = @transform_0, window_bounds = array<i64: 1, 4, 256>}, {pipeline_mode = #tpu.pipeline_mode<synchronous>, transform_indices = @transform_1, window_bounds = array<i64: 16, 4>}, {pipeline_mode = #tpu.pipeline_mode<synchronous>, transform_indices = @transform_2, window_bounds = array<i64: 16, 1>}, {pipeline_mode = #tpu.pipeline_mode<synchronous>, transform_indices = @transform_3, window_bounds = array<i64: 4, 16>}, {pipeline_mode = #tpu.pipeline_mode<synchronous>, transform_indices = @transform_4, window_bounds = array<i64: 4, 1>}, {transform_indices = @transform_5, window_bounds = array<i64: 1, 4, 256>}, {transform_indices = @transform_6, window_bounds = array<i64: 1, 4, 256>}]} {
    %c0 = arith.constant 0 : index
    %c0_0 = arith.constant 0 : index
    %0 = vector.load %arg2[%c0, %c0_0] : memref<16x4xbf16, #tpu.memory_space<vmem>>, vector<16x4xbf16>
    %c0_1 = arith.constant 0 : index
    %c0_2 = arith.constant 0 : index
    %c0_3 = arith.constant 0 : index
    %1 = vector.load %arg1[%c0_1, %c0_2, %c0_3] : memref<1x4x256xbf16, #tpu.memory_space<vmem>>, vector<1x4x256xbf16>
    %2 = vector.shape_cast %1 : vector<1x4x256xbf16> to vector<4x256xbf16>
    %cst = arith.constant dense<0.000000e+00> : vector<16x256xf32>
    %3 = tpu.matmul %0, %2, %cst {dimension_numbers = #tpu.dot_dimension_numbers<[1], [0], [0], [1], [0, 0, 1, 1], [], []>} : vector<16x4xbf16>, vector<4x256xbf16>, vector<16x256xf32> -> vector<16x256xf32>
    %c0_4 = arith.constant 0 : index
    %c0_5 = arith.constant 0 : index
    %4 = vector.load %arg3[%c0_4, %c0_5] : memref<16x1xf32, #tpu.memory_space<vmem>>, vector<16x1xf32>
    %5 = vector.broadcast %4 : vector<16x1xf32> to vector<16x256xf32>
    %6 = arith.addf %3, %5 : vector<16x256xf32>
    %cst_6 = arith.constant 5.000000e-01 : f32
    %7 = vector.broadcast %cst_6 : f32 to vector<16x256xf32>
    %8 = arith.mulf %7, %6 : vector<16x256xf32>
    %cst_7 = arith.constant 0.707106769 : f32
    %9 = vector.broadcast %cst_7 : f32 to vector<16x256xf32>
    %10 = arith.mulf %6, %9 : vector<16x256xf32>
    %cst_8 = arith.constant 0.000000e+00 : f32
    %11 = vector.broadcast %cst_8 : f32 to vector<16x256xf32>
    %12 = arith.cmpf olt, %10, %11 : vector<16x256xf32>
    %cst_9 = arith.constant -1.000000e+00 : f32
    %cst_10 = arith.constant 1.000000e+00 : f32
    %13 = vector.broadcast %cst_9 : f32 to vector<16x256xf32>
    %14 = vector.broadcast %cst_10 : f32 to vector<16x256xf32>
    %15 = arith.select %12, %13, %14 : vector<16x256xi1>, vector<16x256xf32>
    %16 = arith.mulf %10, %15 : vector<16x256xf32>
    %cst_11 = arith.constant 0.327591091 : f32
    %17 = vector.broadcast %cst_11 : f32 to vector<16x256xf32>
    %18 = arith.mulf %17, %16 : vector<16x256xf32>
    %cst_12 = arith.constant 1.000000e+00 : f32
    %19 = vector.broadcast %cst_12 : f32 to vector<16x256xf32>
    %20 = arith.addf %19, %18 : vector<16x256xf32>
    %cst_13 = arith.constant 1.000000e+00 : f32
    %21 = vector.broadcast %cst_13 : f32 to vector<16x256xf32>
    %22 = arith.divf %21, %20 : vector<16x256xf32>
    %cst_14 = arith.constant 1.06140542 : f32
    %23 = vector.broadcast %cst_14 : f32 to vector<16x256xf32>
    %24 = arith.mulf %23, %22 : vector<16x256xf32>
    %cst_15 = arith.constant -1.45315206 : f32
    %25 = vector.broadcast %cst_15 : f32 to vector<16x256xf32>
    %26 = arith.addf %24, %25 : vector<16x256xf32>
    %27 = arith.mulf %26, %22 : vector<16x256xf32>
    %cst_16 = arith.constant 1.42141378 : f32
    %28 = vector.broadcast %cst_16 : f32 to vector<16x256xf32>
    %29 = arith.addf %27, %28 : vector<16x256xf32>
    %30 = arith.mulf %29, %22 : vector<16x256xf32>
    %cst_17 = arith.constant -0.284496725 : f32
    %31 = vector.broadcast %cst_17 : f32 to vector<16x256xf32>
    %32 = arith.addf %30, %31 : vector<16x256xf32>
    %33 = arith.mulf %32, %22 : vector<16x256xf32>
    %cst_18 = arith.constant 0.254829586 : f32
    %34 = vector.broadcast %cst_18 : f32 to vector<16x256xf32>
    %35 = arith.addf %33, %34 : vector<16x256xf32>
    %36 = arith.mulf %35, %22 : vector<16x256xf32>
    %cst_19 = arith.constant 0.000000e+00 : f32
    %37 = vector.broadcast %cst_19 : f32 to vector<16x256xf32>
    %38 = arith.subf %37, %16 : vector<16x256xf32>
    %39 = arith.mulf %38, %16 : vector<16x256xf32>
    %40 = math.exp %39 : vector<16x256xf32>
    %41 = arith.mulf %36, %40 : vector<16x256xf32>
    %cst_20 = arith.constant 1.000000e+00 : f32
    %42 = vector.broadcast %cst_20 : f32 to vector<16x256xf32>
    %43 = arith.subf %42, %41 : vector<16x256xf32>
    %44 = arith.mulf %15, %43 : vector<16x256xf32>
    %cst_21 = arith.constant 1.000000e+00 : f32
    %45 = vector.broadcast %cst_21 : f32 to vector<16x256xf32>
    %46 = arith.addf %45, %44 : vector<16x256xf32>
    %47 = arith.mulf %8, %46 : vector<16x256xf32>
    %c0_22 = arith.constant 0 : index
    %c0_23 = arith.constant 0 : index
    %48 = vector.load %arg4[%c0_22, %c0_23] : memref<4x16xbf16, #tpu.memory_space<vmem>>, vector<4x16xbf16>
    %49 = arith.truncf %47 : vector<16x256xf32> to vector<16x256xbf16>
    %cst_24 = arith.constant dense<0.000000e+00> : vector<4x256xf32>
    %50 = tpu.matmul %48, %49, %cst_24 {dimension_numbers = #tpu.dot_dimension_numbers<[1], [0], [0], [1], [0, 0, 1, 1], [], []>} : vector<4x16xbf16>, vector<16x256xbf16>, vector<4x256xf32> -> vector<4x256xf32>
    %c0_25 = arith.constant 0 : index
    %c0_26 = arith.constant 0 : index
    %51 = vector.load %arg5[%c0_25, %c0_26] : memref<4x1xf32, #tpu.memory_space<vmem>>, vector<4x1xf32>
    %52 = vector.broadcast %51 : vector<4x1xf32> to vector<4x256xf32>
    %53 = arith.addf %50, %52 : vector<4x256xf32>
    %cst_27 = arith.constant 5.000000e-01 : f32
    %54 = vector.broadcast %cst_27 : f32 to vector<4x256xf32>
    %55 = arith.mulf %54, %53 : vector<4x256xf32>
    %cst_28 = arith.constant 0.707106769 : f32
    %56 = vector.broadcast %cst_28 : f32 to vector<4x256xf32>
    %57 = arith.mulf %53, %56 : vector<4x256xf32>
    %cst_29 = arith.constant 0.000000e+00 : f32
    %58 = vector.broadcast %cst_29 : f32 to vector<4x256xf32>
    %59 = arith.cmpf olt, %57, %58 : vector<4x256xf32>
    %cst_30 = arith.constant -1.000000e+00 : f32
    %cst_31 = arith.constant 1.000000e+00 : f32
    %60 = vector.broadcast %cst_30 : f32 to vector<4x256xf32>
    %61 = vector.broadcast %cst_31 : f32 to vector<4x256xf32>
    %62 = arith.select %59, %60, %61 : vector<4x256xi1>, vector<4x256xf32>
    %63 = arith.mulf %57, %62 : vector<4x256xf32>
    %cst_32 = arith.constant 0.327591091 : f32
    %64 = vector.broadcast %cst_32 : f32 to vector<4x256xf32>
    %65 = arith.mulf %64, %63 : vector<4x256xf32>
    %cst_33 = arith.constant 1.000000e+00 : f32
    %66 = vector.broadcast %cst_33 : f32 to vector<4x256xf32>
    %67 = arith.addf %66, %65 : vector<4x256xf32>
    %cst_34 = arith.constant 1.000000e+00 : f32
    %68 = vector.broadcast %cst_34 : f32 to vector<4x256xf32>
    %69 = arith.divf %68, %67 : vector<4x256xf32>
    %cst_35 = arith.constant 1.06140542 : f32
    %70 = vector.broadcast %cst_35 : f32 to vector<4x256xf32>
    %71 = arith.mulf %70, %69 : vector<4x256xf32>
    %cst_36 = arith.constant -1.45315206 : f32
    %72 = vector.broadcast %cst_36 : f32 to vector<4x256xf32>
    %73 = arith.addf %71, %72 : vector<4x256xf32>
    %74 = arith.mulf %73, %69 : vector<4x256xf32>
    %cst_37 = arith.constant 1.42141378 : f32
    %75 = vector.broadcast %cst_37 : f32 to vector<4x256xf32>
    %76 = arith.addf %74, %75 : vector<4x256xf32>
    %77 = arith.mulf %76, %69 : vector<4x256xf32>
    %cst_38 = arith.constant -0.284496725 : f32
    %78 = vector.broadcast %cst_38 : f32 to vector<4x256xf32>
    %79 = arith.addf %77, %78 : vector<4x256xf32>
    %80 = arith.mulf %79, %69 : vector<4x256xf32>
    %cst_39 = arith.constant 0.254829586 : f32
    %81 = vector.broadcast %cst_39 : f32 to vector<4x256xf32>
    %82 = arith.addf %80, %81 : vector<4x256xf32>
    %83 = arith.mulf %82, %69 : vector<4x256xf32>
    %cst_40 = arith.constant 0.000000e+00 : f32
    %84 = vector.broadcast %cst_40 : f32 to vector<4x256xf32>
    %85 = arith.subf %84, %63 : vector<4x256xf32>
    %86 = arith.mulf %85, %63 : vector<4x256xf32>
    %87 = math.exp %86 : vector<4x256xf32>
    %88 = arith.mulf %83, %87 : vector<4x256xf32>
    %cst_41 = arith.constant 1.000000e+00 : f32
    %89 = vector.broadcast %cst_41 : f32 to vector<4x256xf32>
    %90 = arith.subf %89, %88 : vector<4x256xf32>
    %91 = arith.mulf %62, %90 : vector<4x256xf32>
    %cst_42 = arith.constant 1.000000e+00 : f32
    %92 = vector.broadcast %cst_42 : f32 to vector<4x256xf32>
    %93 = arith.addf %92, %91 : vector<4x256xf32>
    %94 = arith.mulf %55, %93 : vector<4x256xf32>
    %c0_43 = arith.constant 0 : index
    %c0_44 = arith.constant 0 : index
    %c0_45 = arith.constant 0 : index
    %95 = vector.load %arg6[%c0_43, %c0_44, %c0_45] : memref<1x4x256xf32, #tpu.memory_space<vmem>>, vector<1x4x256xf32>
    %96 = vector.shape_cast %95 : vector<1x4x256xf32> to vector<4x256xf32>
    %97 = arith.addf %94, %96 : vector<4x256xf32>
    %c0_46 = arith.constant 0 : index
    %c0_47 = arith.constant 0 : index
    %c0_48 = arith.constant 0 : index
    %98 = vector.load %arg7[%c0_46, %c0_47, %c0_48] : memref<1x4x256xf32, #tpu.memory_space<vmem>>, vector<1x4x256xf32>
    %99 = vector.shape_cast %98 : vector<1x4x256xf32> to vector<4x256xf32>
    %100 = vector.shape_cast %97 : vector<4x256xf32> to vector<1x4x256xf32>
    tpu.vector_store %arg7[%c0_46, %c0_47, %c0_48], %100 {strides = array<i32>} : memref<1x4x256xf32, #tpu.memory_space<vmem>>, vector<1x4x256xf32>,
    return
  }
  func.func @transform_0(%arg0: i32) -> (i32, i32, i32) {
    %c0_i32 = arith.constant 0 : i32
    %c0_i32_0 = arith.constant 0 : i32
    %c0_i32_1 = arith.constant 0 : i32
    return %arg0, %c0_i32, %c0_i32_0 : i32, i32, i32
  }
  func.func @transform_1(%arg0: i32) -> (i32, i32) {
    %c0_i32 = arith.constant 0 : i32
    %c0_i32_0 = arith.constant 0 : i32
    %c0_i32_1 = arith.constant 0 : i32
    return %c0_i32, %c0_i32_0 : i32, i32
  }
  func.func @transform_2(%arg0: i32) -> (i32, i32) {
    %c0_i32 = arith.constant 0 : i32
    %c0_i32_0 = arith.constant 0 : i32
    %c0_i32_1 = arith.constant 0 : i32
    return %c0_i32, %c0_i32_0 : i32, i32
  }
  func.func @transform_3(%arg0: i32) -> (i32, i32) {
    %c0_i32 = arith.constant 0 : i32
    %c0_i32_0 = arith.constant 0 : i32
    %c0_i32_1 = arith.constant 0 : i32
    return %c0_i32, %c0_i32_0 : i32, i32
  }
  func.func @transform_4(%arg0: i32) -> (i32, i32) {
    %c0_i32 = arith.constant 0 : i32
    %c0_i32_0 = arith.constant 0 : i32
    %c0_i32_1 = arith.constant 0 : i32
    return %c0_i32, %c0_i32_0 : i32, i32
  }
  func.func @transform_5(%arg0: i32) -> (i32, i32, i32) {
    %c0_i32 = arith.constant 0 : i32
    %c0_i32_0 = arith.constant 0 : i32
    %c0_i32_1 = arith.constant 0 : i32
    return %arg0, %c0_i32, %c0_i32_0 : i32, i32, i32
  }
  func.func @transform_6(%arg0: i32) -> (i32, i32, i32) {
    %c0_i32 = arith.constant 0 : i32
    %c0_i32_0 = arith.constant 0 : i32
    %c0_i32_1 = arith.constant 0 : i32
    return %arg0, %c0_i32, %c0_i32_0 : i32, i32, i32
  }
}

</mosaic_0001>

<bundles_post_ra>
// kernel: search_transfer2_forward.3
= control target key start
LH: loop header
LB: loop body
LE: loop exit
PB: predicated region body
PF: predicated region fallthrough
CT: control target
= control target key end

     0   :  { %s543_s12 = smov 0   ;;  %s605_s0 = inlined_call_operand.vmem [shape: bf16[2,36,256], index: 0, kind: input, shape index: {}]   ;;  %s606_s1 = inlined_call_operand.vmem [shape: bf16[12,36], index: 1, kind: input, shape index: {}]   ;;  %s607_s2 = inlined_call_operand.vmem [shape: f32[12,1], index: 2, kind: input, shape index: {}]   ;;  %s608_s3 = inlined_call_operand.vmem [shape: bf16[2,12,256], index: 3, kind: output, shape index: {}]  }
   0x1 LB: > { %s452_s13 = sadd.s32 4294967295, %s519_s12   ;;  %p456_p0 = scmp.ge.s32.totalorder %s519_s12, 1  ;;  %s519_s12 = sphi %s543_s12, %s13_s12  }
   0x2   : > { %p137_p1 = scmp.lt.s32.totalorder %s519_s12, 3 }
   0x4   : > { %p138_p2 = pnand %p456_p0, %p137_p1 }
   0x5   : > { %p161_p3 = scmp.lt.s32.totalorder (!%p138_p2), %s452_s13, 1  ;;  %v521_v0 = vmov (!%p138_p2), 0   ;;  %v179_v1 = vld [vmem:[%s607_s2] sm:$0xff] (!%p138_p2)  ;;  %v180_v2 = vld [vmem:[%s607_s2 + $0x8] sm:$0xf] (!%p138_p2)  ;;  %vm225_vm0 = vcmask (!%p138_p2), 1041408  }
   0x6   : > { %141 = sbr.rel (%p138_p2) target bundleno = 299 (0x12b), region = 32  ;;  %264 = vmatprep.mubr.bf16.mxu0 (!%p138_p2), %v521_v0  ;;  %487 = vset.pattern.permute.xlu0 (!%p138_p2), %v521_v0  ;;  %v496_v11 = vld [vmem:[%s606_s1] sm:$0x3f] (!%p138_p2)   ;;  %vm221_vm1 = vcmask (!%p138_p2), 293888   ;;  %v522_v25 = vmov (!%p138_p2), 1.0  }
   0x7   : > { %183 = vperm.xlu0 (!%p138_p2), %487, %v179_v1  }
   0xb   : > { %188 = vperm.xlu0 (!%p138_p2), %487, %v180_v2  }
   0xd   : > { %s610_s13 = smov (!%p161_p3, %s452_s13), 1 }
   0xe   : > { %s476_s18 = smul.u32 40, %s610_s13  ;;  %s473_s24 = sshll.u32 %s610_s13, 4 }
   0xf   : > { %s170_s27 = scalar_lea.vmem %s608_s3, %s473_s24 }
  0x10   : > { %s165_s21 = scalar_lea.vmem %s605_s0, %s476_s18 }
  0x11   : > { %v488_v3 = vld [vmem:[%s165_s21 + $0x4] ss:$8 sps:$4 sm:$0xff]   ;;  %v490_v4 = vld [vmem:[%s165_s21] ss:$8 sps:$4 sm:$0xff]   ;;  %v491_v5 = vld [vmem:[%s165_s21 + $0x14] ss:$8 sps:$4 sm:$0xff]  }
  0x12   : > { %232 = vmatprep.subr.bf16.mxu0 %v488_v3  ;;  %v178_v6 = vld [vmem:[%s165_s21 + $0x20] sm:$0x33]  ;;  %v493_v7 = vld [vmem:[%s165_s21 + $0x10] ss:$8 sps:$4 sm:$0xff]  }
  0x13   : > { %233 = vmatpush1.bf16.msra.mxu0 %v490_v4  ;;  %v466_v8 = vcombine.high %v178_v6, %v178_v6  ;;  %v465_v9 = vcombine.low %v178_v6, %v178_v6 }
  0x14   : > { %234 = vmatprep.subr.bf16.mxu0 %v491_v5 }
  0x15   : > { %v227_v10 = vsel %vm225_vm0, %v465_v9, 0 }
  0x17   : > { %235 = vmatpush1.bf16.msra.mxu0 %v493_v7 }
  0x18   : > { %467 = vmatprep.subr.msk.bf16.mxu0 %vm225_vm0, %v466_v8 }
  0x1b   : > { %237 = vmatpush1.bf16.msra.mxu0 %v227_v10 }
  0x1e   : > { %468 = vmatmul.mubr.msk.bf16.vlgmr.msra.gmra.mrb[0].mxu0 %vm221_vm1, %v496_v11 }
  0x86   : > { %v184_v12 = vpop.permute.xlu0 %183 }
  0x8a   : > { %v189_v16 = vpop.permute.xlu0 %188 }
  0xf1   : > { %v266_v13 = vpop.f32.mrb[0].mxu0 }
  0xf2   : > { %v566_v14 = vadd.f32 %v266_v13, %v184_v12  ;;  %v268_v15 = vpop.f32.mrb[1].mxu0 }
  0xf3   : > { %v568_v17 = vadd.f32 %v268_v15, %v184_v12  ;;  %v270_v18 = vpop.f32.mrb[2].mxu0 }
  0xf4   : > { %v279_v19 = vmul.f32 0.70710677, %v566_v14  ;;  %v571_v20 = vadd.f32 %v270_v18, %v189_v16  ;;  %v272_v21 = vpop.f32.mrb[3].mxu0 }
  0xf5   : > { %v280_v22 = vmul.f32 0.70710677, %v568_v17  ;;  %v574_v23 = vadd.f32 %v272_v21, %v189_v16 }
  0xf6   : > { %vm283_vm2 = vcmp.lt.f32.partialorder %v279_v19, 0.0  ;;  %v281_v24 = vmul.f32 0.70710677, %v571_v20 }
  0xf7   : > { %v577_v26 = vsel %vm283_vm2, -1.0, %v522_v25  ;;  %vm284_vm3 = vcmp.lt.f32.partialorder %v280_v22, 0.0  ;;  %v282_v27 = vmul.f32 0.70710677, %v574_v23 }
  0xf8   : > { %v291_v28 = vmul.f32 %v577_v26, %v279_v19  ;;  %v581_v29 = vsel %vm284_vm3, -1.0, %v522_v25  ;;  %vm285_vm4 = vcmp.lt.f32.partialorder %v281_v24, 0.0 }
  0xf9   : > { %v292_v30 = vmul.f32 %v581_v29, %v280_v22  ;;  %v584_v31 = vsel %vm285_vm4, -1.0, %v522_v25  ;;  %vm286_vm5 = vcmp.lt.f32.partialorder %v282_v27, 0.0 }
  0xfa   : > { %v295_v32 = vmul.f32 0.3275911, %v291_v28  ;;  %v293_v33 = vmul.f32 %v584_v31, %v281_v24  ;;  %v587_v34 = vsel %vm286_vm5, -1.0, %v522_v25  ;;  %v347_v43 = vsub.f32 0.0, %v291_v28 }
  0xfb   : > { %v296_v35 = vmul.f32 0.3275911, %v292_v30  ;;  %v294_v36 = vmul.f32 %v587_v34, %v282_v27  ;;  %v348_v44 = vsub.f32 0.0, %v292_v30 }
  0xfc   : > { %v299_v37 = vadd.f32 1.0, %v295_v32  ;;  %v297_v38 = vmul.f32 0.3275911, %v293_v33  ;;  %v351_v46 = vmul.f32 %v347_v43, %v291_v28  ;;  %v349_v47 = vsub.f32 0.0, %v293_v33 }
  0xfd   : > { %v300_v39 = vadd.f32 1.0, %v296_v35  ;;  %v298_v40 = vmul.f32 0.3275911, %v294_v36  ;;  %v352_v50 = vmul.f32 %v348_v44, %v292_v30  ;;  %v350_v52 = vsub.f32 0.0, %v294_v36 }
  0xfe   : > { %497 = vrcp.f32 %v299_v37  ;;  %v301_v41 = vadd.f32 1.0, %v297_v38  ;;  %v355_v55 = vmul.f32 1.442695, %v351_v46  ;;  %v353_v57 = vmul.f32 %v349_v47, %v293_v33 }
  0xff   : > { %499 = vrcp.f32 %v300_v39  ;;  %v302_v42 = vadd.f32 1.0, %v298_v40  ;;  %v357_v59 = vmul.f32 1.442695, %v352_v50  ;;  %v354_v63 = vmul.f32 %v350_v52, %v294_v36 }
 0x100   : > { %501 = vrcp.f32 %v301_v41  ;;  %v359_v4 = vmul.f32 1.442695, %v353_v57 }
 0x101   : > { %503 = vrcp.f32 %v302_v42  ;;  %v361_v9 = vmul.f32 1.442695, %v354_v63 }
 0x102   : > { %505 = vpow2.f32 %v355_v55  ;;  %v276_v55 = vmul.f32 0.5, %v568_v17 }
 0x103   : > { %507 = vpow2.f32 %v357_v59 }
 0x104   : > { %509 = vpow2.f32 %v359_v4 }
 0x105   : > { %511 = vpow2.f32 %v361_v9 }
 0x108   : > { %v498_v45 = vpop.eup %497 }
 0x109   : > { %v500_v48 = vpop.eup %499  ;;  %v311_v49 = vmul.f32 1.0614054, %v498_v45 }
 0x10a   : > { %v312_v51 = vmul.f32 1.0614054, %v500_v48  ;;  %v502_v54 = vpop.eup %501 }
 0x10b   : > { %v315_v53 = vadd.f32 -1.4531521, %v311_v49  ;;  %v313_v60 = vmul.f32 1.0614054, %v502_v54  ;;  %v504_v61 = vpop.eup %503 }
 0x10c   : > { %v316_v56 = vadd.f32 -1.4531521, %v312_v51  ;;  %v314_v2 = vmul.f32 1.0614054, %v504_v61  ;;  %v506_v32 = vpop.eup %505 }
 0x10d   : > { %v319_v58 = vmul.f32 %v498_v45, %v315_v53  ;;  %v317_v1 = vadd.f32 -1.4531521, %v313_v60  ;;  %v508_v35 = vpop.eup %507 }
 0x10e   : > { %v320_v62 = vmul.f32 %v500_v48, %v316_v56  ;;  %v318_v7 = vadd.f32 -1.4531521, %v314_v2  ;;  %v510_v43 = vpop.eup %509 }
 0x10f   : > { %v323_v0 = vadd.f32 1.4214138, %v319_v58  ;;  %v321_v6 = vmul.f32 %v502_v54, %v317_v1 }
 0x110   : > { %v324_v3 = vadd.f32 1.4214138, %v320_v62  ;;  %v322_v12 = vmul.f32 %v504_v61, %v318_v7  ;;  %v278_v62 = vmul.f32 0.5, %v574_v23 }
 0x111   : > { %v327_v5 = vmul.f32 %v498_v45, %v323_v0  ;;  %v325_v11 = vadd.f32 1.4214138, %v321_v6 }
 0x112   : > { %v328_v8 = vmul.f32 %v500_v48, %v324_v3  ;;  %v326_v18 = vadd.f32 1.4214138, %v322_v12 }
 0x113   : > { %v331_v10 = vadd.f32 -0.28449672, %v327_v5  ;;  %v329_v16 = vmul.f32 %v502_v54, %v325_v11 }
 0x114   : > { %v332_v13 = vadd.f32 -0.28449672, %v328_v8  ;;  %v330_v24 = vmul.f32 %v504_v61, %v326_v18 }
 0x115   : > { %v335_v15 = vmul.f32 %v498_v45, %v331_v10  ;;  %v333_v22 = vadd.f32 -0.28449672, %v329_v16 }
 0x116   : > { %v336_v19 = vmul.f32 %v500_v48, %v332_v13  ;;  %v334_v30 = vadd.f32 -0.28449672, %v330_v24 }
 0x117   : > { %v339_v21 = vadd.f32 0.2548296, %v335_v15  ;;  %v337_v28 = vmul.f32 %v502_v54, %v333_v22 }
 0x118   : > { %v340_v25 = vadd.f32 0.2548296, %v336_v19  ;;  %v338_v38 = vmul.f32 %v504_v61, %v334_v30 }
 0x119   : > { %v343_v27 = vmul.f32 %v498_v45, %v339_v21  ;;  %v341_v37 = vadd.f32 0.2548296, %v337_v28  ;;  %v512_v45 = vpop.eup %511 }
 0x11a   : > { %v344_v33 = vmul.f32 %v500_v48, %v340_v25  ;;  %v342_v42 = vadd.f32 0.2548296, %v338_v38  ;;  %v275_v48 = vmul.f32 0.5, %v566_v14 }
 0x11b   : > { %v363_v36 = vmul.f32 %v506_v32, %v343_v27  ;;  %v345_v41 = vmul.f32 %v502_v54, %v341_v37 }
 0x11c   : > { %v364_v39 = vmul.f32 %v508_v35, %v344_v33  ;;  %v346_v49 = vmul.f32 %v504_v61, %v342_v42 }
 0x11d   : > { %v367_v40 = vsub.f32 1.0, %v363_v36  ;;  %v365_v47 = vmul.f32 %v510_v43, %v345_v41 }
 0x11e   : > { %v368_v44 = vsub.f32 1.0, %v364_v39  ;;  %v366_v53 = vmul.f32 %v512_v45, %v346_v49 }
 0x11f   : > { %v371_v46 = vmul.f32 %v367_v40, %v577_v26  ;;  %v369_v52 = vsub.f32 1.0, %v365_v47  ;;  %v277_v26 = vmul.f32 0.5, %v571_v20 }
 0x120   : > { %v372_v50 = vmul.f32 %v368_v44, %v581_v29  ;;  %v370_v58 = vsub.f32 1.0, %v366_v53 }
 0x121   : > { %v375_v51 = vadd.f32 1.0, %v371_v46  ;;  %v373_v57 = vmul.f32 %v369_v52, %v584_v31 }
 0x122   : > { %v376_v56 = vadd.f32 1.0, %v372_v50  ;;  %v374_v14 = vmul.f32 %v370_v58, %v587_v34 }
 0x123   : > { %v379_v54 = vmul.f32 %v375_v51, %v275_v48  ;;  %v377_v29 = vadd.f32 1.0, %v373_v57 }
 0x124   : > { %v380_v59 = vmul.f32 %v376_v56, %v276_v55  ;;  %v378_v17 = vadd.f32 1.0, %v374_v14 }
 0x125   : > { %v381_v61 = vmul.f32 %v377_v29, %v277_v26 }
 0x126   : > { %v474_v60 = vpack.c.bf16 %v380_v59, %v379_v54  ;;  %v382_v63 = vmul.f32 %v378_v17, %v278_v62 }
 0x128   : > { %395 = vst [vmem:[%s170_s27] sm:$0xff] %v474_v60  ;;  %v475_v0 = vpack.c.bf16 %v382_v63, %v381_v61 }
 0x12a   : > { %396 = vst [vmem:[%s170_s27 + $0x8] sm:$0x33] %v475_v0 }
 0x12b PF: > { %s13_s12 = sadd.s32 1, %s519_s12  }
 0x12c   : > { %p10_p4 = scmp.ge.s32.totalorder %s13_s12, 4  }
 0x12e   :  { %12 = sbr.rel (!%p10_p4) target bundleno = 1 (0x1), region = 62 }

// kernel: search_transfer2_forward.4
= control target key start
LH: loop header
LB: loop body
LE: loop exit
PB: predicated region body
PF: predicated region fallthrough
CT: control target
= control target key end

     0   :  { %s982_s18 = smov 0   ;;  %s1115_s0 = inlined_call_operand.vmem [shape: bf16[2,4,256], index: 0, kind: input, shape index: {}]   ;;  %s1116_s1 = inlined_call_operand.vmem [shape: bf16[2,4,256], index: 1, kind: input, shape index: {}]   ;;  %s1117_s2 = inlined_call_operand.vmem [shape: bf16[2,4,256], index: 2, kind: input, shape index: {}]   ;;  %s1118_s3 = inlined_call_operand.vmem [shape: bf16[256,256], index: 3, kind: input, shape index: {}]   ;;  %s1119_s4 = inlined_call_operand.vmem [shape: f32[1,256], index: 4, kind: input, shape index: {}]   ;;  %s1120_s5 = inlined_call_operand.vmem [shape: bf16[2,4,256], index: 5, kind: output, shape index: {}]  }
   0x1 LB: > { %s823_s19 = sadd.s32 4294967295, %s948_s18   ;;  %p827_p0 = scmp.ge.s32.totalorder %s948_s18, 1  ;;  %s948_s18 = sphi %s982_s18, %s15_s18  }
   0x2   : > { %p207_p1 = scmp.lt.s32.totalorder %s948_s18, 3 }
   0x4   : > { %p208_p2 = pnand %p827_p0, %p207_p1 }
   0x5   : > { %v890_v0 = vld [vmem:[%s1118_s3 + $0x4] ss:$8 sps:$4 sm:$0xff] (!%p208_p2)   ;;  %v892_v1 = vld [vmem:[%s1118_s3] ss:$8 sps:$4 sm:$0xff] (!%p208_p2)   ;;  %v893_v2 = vld [vmem:[%s1118_s3 + $0x14] ss:$8 sps:$4 sm:$0xff] (!%p208_p2)   ;;  %v517_v8 = vlaneseq (!%p208_p2) }
   0x6   : > { %211 = sbr.rel (%p208_p2) target bundleno = 1032 (0x408), region = 40  ;;  %470 = vmatprep.subr.bf16.mxu0 (!%p208_p2), %v890_v0  ;;  %v895_v3 = vld [vmem:[%s1118_s3 + $0x10] ss:$8 sps:$4 sm:$0xff] (!%p208_p2)   ;;  %v896_v4 = vld [vmem:[%s1118_s3 + $0x24] ss:$8 sps:$4 sm:$0xff] (!%p208_p2)   ;;  %p245_p3 = scmp.lt.s32.totalorder (!%p208_p2), %s823_s19, 1 }
   0x7   : > { %471 = vmatpush1.bf16.msra.mxu0 (!%p208_p2), %v892_v1  ;;  %v898_v5 = vld [vmem:[%s1118_s3 + $0x20] ss:$8 sps:$4 sm:$0xff] (!%p208_p2)   ;;  %v899_v6 = vld [vmem:[%s1118_s3 + $0x34] ss:$8 sps:$4 sm:$0xff] (!%p208_p2)   ;;  %v901_v7 = vld [vmem:[%s1118_s3 + $0x30] ss:$8 sps:$4 sm:$0xff] (!%p208_p2)  }
   0x8   : > { %472 = vmatprep.subr.bf16.mxu0 (!%p208_p2), %v893_v2  ;;  %v950_v9 = vmov (!%p208_p2), 1983009808   ;;  %v902_v11 = vld [vmem:[%s1118_s3 + $0x44] ss:$8 sps:$4 sm:$0xff] (!%p208_p2)   ;;  %v904_v12 = vld [vmem:[%s1118_s3 + $0x40] ss:$8 sps:$4 sm:$0xff] (!%p208_p2)  }
   0x9   : > { %v606_v10 = vunpack.c.l.s4 (!%p208_p2), %v950_v9  ;;  %v1022_v13 = vshrl.u32 (!%p208_p2), %v517_v8, 7  ;;  %v905_v15 = vld [vmem:[%s1118_s3 + $0x54] ss:$8 sps:$4 sm:$0xff] (!%p208_p2)   ;;  %v907_v16 = vld [vmem:[%s1118_s3 + $0x50] ss:$8 sps:$4 sm:$0xff] (!%p208_p2)   ;;  %vm655_vm0 = vcmask (!%p208_p2), 27648  }
   0xa   : > { %v908_v19 = vld [vmem:[%s1118_s3 + $0x64] ss:$8 sps:$4 sm:$0xff] (!%p208_p2)   ;;  %v514_v23 = vld [vmem:[%s1119_s4] sm:$0x3] (!%p208_p2)  ;;  %v911_v29 = vld [vmem:[%s1118_s3 + $0x74] ss:$8 sps:$4 sm:$0xff] (!%p208_p2)  }
   0xb   : > { %473 = vmatpush1.bf16.msra.mxu0 (!%p208_p2), %v895_v3  ;;  %v607_v14 = vunpack.c.0.s8 (!%p208_p2), %v606_v10  ;;  %v523_v18 = vsub.s32 (!%p208_p2), 1, %v1022_v13  ;;  %v910_v24 = vld [vmem:[%s1118_s3 + $0x60] ss:$8 sps:$4 sm:$0xff] (!%p208_p2)   ;;  %v519_v27 = vsub.s32 (!%p208_p2), 0, %v1022_v13  ;;  %v913_v32 = vld [vmem:[%s1118_s3 + $0x70] ss:$8 sps:$4 sm:$0xff] (!%p208_p2)  }
   0xc   : > { %474 = vmatprep.subr.bf16.mxu0 (!%p208_p2), %v896_v4  ;;  %v914_v34 = vld [vmem:[%s1118_s3 + $0x84] ss:$8 sps:$4 sm:$0xff] (!%p208_p2)   ;;  %v916_v35 = vld [vmem:[%s1118_s3 + $0x80] ss:$8 sps:$4 sm:$0xff] (!%p208_p2)   ;;  %v917_v36 = vld [vmem:[%s1118_s3 + $0x94] ss:$8 sps:$4 sm:$0xff] (!%p208_p2)  }
   0xd   : > { %s1122_s19 = smov (!%p245_p3, %s823_s19), 1  ;;  %v610_v17 = vsub.s32 %v607_v14, %v1022_v13  ;;  %v524_v28 = vrot.slane %v514_v23, %v523_v18  ;;  %v520_v33 = vrot.slane %v514_v23, %v519_v27  ;;  %v919_v37 = vld [vmem:[%s1118_s3 + $0x90] ss:$8 sps:$4 sm:$0xff]   ;;  %v920_v38 = vld [vmem:[%s1118_s3 + $0xa4] ss:$8 sps:$4 sm:$0xff]   ;;  %vm682_vm1 = vcmask 1041408  }
   0xe   : > { %s1020_s15 = sshll.u32 %s1122_s19, 2  ;;  %v922_v39 = vld [vmem:[%s1118_s3 + $0xa0] ss:$8 sps:$4 sm:$0xff]   ;;  %v923_v40 = vld [vmem:[%s1118_s3 + $0xb4] ss:$8 sps:$4 sm:$0xff]   ;;  %v951_v9 = vmov 0  }
   0xf   : > { %475 = vmatpush1.bf16.msra.mxu0 %v898_v5  ;;  %s249_s22 = scalar_lea.vmem %s1115_s0, %s1020_s15  ;;  %s254_s26 = scalar_lea.vmem %s1116_s1, %s1020_s15  ;;  %594 = vmatprep.mubr.f32.mxu1 %v524_v28  ;;  %v925_v41 = vld [vmem:[%s1118_s3 + $0xb0] ss:$8 sps:$4 sm:$0xff]   ;;  %v926_v42 = vld [vmem:[%s1118_s3 + $0xc4] ss:$8 sps:$4 sm:$0xff]   ;;  %v928_v43 = vld [vmem:[%s1118_s3 + $0xc0] ss:$8 sps:$4 sm:$0xff]  }
  0x10   : > { %476 = vmatprep.subr.bf16.mxu0 %v899_v6  ;;  %v836_v20 = vld.sshfl [vmem:[%s249_s22] sm:$0x33 pattern:$0x76325410]  ;;  %v929_v44 = vld [vmem:[%s1118_s3 + $0xd4] ss:$8 sps:$4 sm:$0xff]   ;;  %s259_s25 = scalar_lea.vmem %s1117_s2, %s1020_s15  ;;  %s264_s28 = scalar_lea.vmem %s1120_s5, %s1020_s15 }
  0x11   : > { %v307_v21 = vcombine.high %v836_v20, %v836_v20  ;;  %v513_v22 = vld [vmem:[%s254_s26] sm:$0xf]  ;;  %v931_v45 = vld [vmem:[%s1118_s3 + $0xd0] ss:$8 sps:$4 sm:$0xff]   ;;  %v932_v46 = vld [vmem:[%s1118_s3 + $0xe4] ss:$8 sps:$4 sm:$0xff]  }
  0x12   : > { %v515_v25 = vunpack.c.l.bf16 %v513_v22  ;;  %v611_v26 = vrot.slane %v513_v22, %v610_v17  ;;  %v934_v47 = vld [vmem:[%s1118_s3 + $0xe0] ss:$8 sps:$4 sm:$0xff]   ;;  %v935_v48 = vld [vmem:[%s1118_s3 + $0xf4] ss:$8 sps:$4 sm:$0xff]   ;;  %v937_v49 = vld [vmem:[%s1118_s3 + $0xf0] ss:$8 sps:$4 sm:$0xff]  }
  0x13   : > { %477 = vmatpush1.bf16.msra.mxu0 %v901_v7  ;;  %502 = vmatprep.mubr.bf16.mxu0 %v307_v21  ;;  %v869_v6 = vld.sshfl [vmem:[%s259_s25] sm:$0x33 pattern:$0x76325410]  ;;  %vm678_vm2 = vcmask 31744  }
  0x14   : > { %478 = vmatprep.subr.bf16.mxu0 %v902_v11  ;;  %v528_v30 = vcombine.high %v515_v25, %v515_v25  ;;  %v612_v31 = vcombine.high %v611_v26, %v611_v26  ;;  %v677_v7 = vcombine.high %v869_v6, %v869_v6  ;;  %v684_v8 = vsel %vm682_vm1, %v869_v6, 0 }
  0x16   : > { %530 = vmatprep.subr.mxu1 %v528_v30 }
  0x17   : > { %479 = vmatpush1.bf16.msra.mxu0 %v904_v12  ;;  %531 = vmatpush1.xpose.msra.mxu1 %v515_v25 }
  0x18   : > { %480 = vmatprep.subr.bf16.mxu0 %v905_v15  ;;  %615 = vmatprep.subr.bf16.mxu1 %v612_v31 }
  0x1a   : > { %595 = vmatmul.mubr.f32.vlgmr.msra.gmra.mrb[0].mxu1 %v520_v33 }
  0x1b   : > { %481 = vmatpush1.bf16.msra.mxu0 %v907_v16  ;;  %616 = vmatpush1.bf16.xpose.msra.mxu1 %v611_v26 }
  0x1c   : > { %482 = vmatprep.subr.bf16.mxu0 %v908_v19  ;;  %870 = vmatprep.subr.msk.bf16.mxu1 %vm682_vm1, %v677_v7 }
  0x1f   : > { %483 = vmatpush1.bf16.msra.mxu0 %v910_v24 }
  0x20   : > { %484 = vmatprep.subr.bf16.mxu0 %v911_v29 }
  0x23   : > { %485 = vmatpush1.bf16.msra.mxu0 %v913_v32 }
  0x24   : > { %486 = vmatprep.subr.bf16.mxu0 %v914_v34 }
  0x27   : > { %487 = vmatpush1.bf16.msra.mxu0 %v916_v35 }
  0x28   : > { %488 = vmatprep.subr.bf16.mxu0 %v917_v36 }
  0x2b   : > { %489 = vmatpush1.bf16.msra.mxu0 %v919_v37 }
  0x2c   : > { %490 = vmatprep.subr.bf16.mxu0 %v920_v38 }
  0x2f   : > { %491 = vmatpush1.bf16.msra.mxu0 %v922_v39 }
  0x30   : > { %492 = vmatprep.subr.bf16.mxu0 %v923_v40 }
  0x33   : > { %493 = vmatpush1.bf16.msra.mxu0 %v925_v41 }
  0x34   : > { %494 = vmatprep.subr.bf16.mxu0 %v926_v42 }
  0x37   : > { %495 = vmatpush1.bf16.msra.mxu0 %v928_v43 }
  0x38   : > { %496 = vmatprep.subr.bf16.mxu0 %v929_v44 }
  0x3b   : > { %497 = vmatpush1.bf16.msra.mxu0 %v931_v45 }
  0x3c   : > { %498 = vmatprep.subr.bf16.mxu0 %v932_v46 }
  0x3f   : > { %499 = vmatpush1.bf16.msra.mxu0 %v934_v47 }
  0x40   : > { %500 = vmatprep.subr.bf16.mxu0 %v935_v48 }
  0x43   : > { %501 = vmatpush1.bf16.msra.mxu0 %v937_v49 }
  0x46   : > { %503 = vmatmul.mubr.bf16.vlgmr.msra.gmra.mrb[0].mxu0 %v836_v20 }
  0xed   : > { %v596_v50 = vpop.f32.mrb[0].mxu1 }
  0xee   : > { %v598_v51 = vpop.f32.mrb[1].mxu1  ;;  %v603_v58 = vrot.slane %v596_v50, %v519_v27 }
 0x119   : > { %v504_v52 = vpop.f32.mrb[0].mxu0 }
 0x11a   : > { %v506_v53 = vpop.f32.mrb[1].mxu0  ;;  %v511_v56 = vpack.c.bf16 %v504_v52, %v504_v52 }
 0x11b   : > { %v512_v54 = vpack.c.bf16 %v506_v53, %v506_v53  ;;  %v508_v55 = vpop.f32.mrb[2].mxu0 }
 0x11c   : > { %v509_v57 = vpop.f32.mrb[3].mxu0 }
 0x11d   : > { %647 = vmatprep.mubr.bf16.mxu1 %v512_v54 }
 0x11e   : > { %648 = vmatmul.mubr.bf16.vlgmr.msra.gmra.mrb[4].mxu1 %v511_v56 }
 0x11f   : > { %690 = vmatpush1.bf16.msra.mxu1 %v684_v8  ;;  %721 = vmatprep.mubr.bf16.mxu1 %v951_v9 }
 0x1f1   : > { %v649_v59 = vpop.f32.mrb[4].mxu1 }
 0x1f2   : > { %v650_v60 = vadd.f32 %v649_v59, %v603_v58  ;;  %v651_v61 = vpop.f32.mrb[5].mxu1 }
 0x1f3   : > { %v652_v62 = vpop.f32.mrb[6].mxu1 }
 0x1f4   : > { %v653_v63 = vpop.f32.mrb[7].mxu1  ;;  %v656_v0 = vsel %vm655_vm0, %v650_v60, -inf }
 0x1f5   : > { %657 = vmax.xlane.f32.xlu0 %v656_v0 }
 0x282   : > { %v658_v1 = vpop.xlane.xlu0 %657 }
 0x283   : > { %v659_v2 = vsub.f32 %v650_v60, %v658_v1 }
 0x285   : > { %v660_v3 = vmul.f32 1.442695, %v659_v2 }
 0x287   : > { %938 = vpow2.f32 %v660_v3 }
 0x291   : > { %v939_v4 = vpop.eup %938 }
 0x292   : > { %v662_v5 = vsel %vm655_vm0, %v939_v4, 0.0 }
 0x293   : > { %663 = vadd.xlane.f32.xlu0 %v662_v5 }
 0x320   : > { %v664_v10 = vpop.xlane.xlu0 %663 }
 0x321   : > { %940 = vrcp.f32 %v664_v10 }
 0x32b   : > { %v941_v11 = vpop.eup %940 }
 0x32c   : > { %v666_v12 = vmul.f32 %v941_v11, %v939_v4 }
 0x32e   : > { %v667_v13 = vpack.c.bf16 %v666_v12, %v666_v12 }
 0x330   : > { %871 = vmatmul.mubr.msk.bf16.vlgmr.msra.gmra.mrb[8].mxu1 %vm678_vm2, %v667_v13 }
 0x403   : > { %v723_v14 = vpop.f32.mrb[8].mxu1 }
 0x404   : > { %v725_v15 = vpop.f32.mrb[9].mxu1 }
 0x405   : > { %v872_v16 = vpack.c.bf16 %v725_v15, %v723_v14  ;;  %v727_v17 = vpop.f32.mrb[10].mxu1 }
 0x406   : > { %v728_v18 = vpop.f32.mrb[11].mxu1 }
 0x407   : > { %873 = vst.sshfl [vmem:[%s264_s28] sm:$0x33 pattern:$0x76325410] %v872_v16 }
 0x408 PF: > { %s15_s18 = sadd.s32 1, %s948_s18  }
 0x409   : > { %p12_p4 = scmp.ge.s32.totalorder %s15_s18, 4  }
 0x40b   :  { %14 = sbr.rel (!%p12_p4) target bundleno = 1 (0x1), region = 76 }

// kernel: search_transfer2_forward.5
= control target key start
LH: loop header
LB: loop body
LE: loop exit
PB: predicated region body
PF: predicated region fallthrough
CT: control target
= control target key end

     0   :  { %s754_s21 = smov 0   ;;  %s831_s0 = inlined_call_operand.vmem [shape: bf16[2,4,256], index: 0, kind: input, shape index: {}]   ;;  %s832_s1 = inlined_call_operand.vmem [shape: bf16[16,4], index: 1, kind: input, shape index: {}]   ;;  %s833_s2 = inlined_call_operand.vmem [shape: f32[16,1], index: 2, kind: input, shape index: {}]   ;;  %s834_s3 = inlined_call_operand.vmem [shape: bf16[4,16], index: 3, kind: input, shape index: {}]   ;;  %s835_s4 = inlined_call_operand.vmem [shape: f32[4,1], index: 4, kind: input, shape index: {}]   ;;  %s836_s5 = inlined_call_operand.vmem [shape: f32[2,4,256], index: 5, kind: input, shape index: {}]   ;;  %s837_s6 = inlined_call_operand.vmem [shape: f32[2,4,256], index: 6, kind: output, shape index: {}]  }
   0x1 LB: > { %s650_s22 = sadd.s32 4294967295, %s715_s21   ;;  %p654_p0 = scmp.ge.s32.totalorder %s715_s21, 1  ;;  %s715_s21 = sphi %s754_s21, %s16_s21  }
   0x2   : > { %p222_p1 = scmp.lt.s32.totalorder %s715_s21, 3 }
   0x4   : > { %p223_p2 = pnand %p654_p0, %p222_p1 }
   0x5   : > { %p257_p3 = scmp.lt.s32.totalorder (!%p223_p2), %s650_s22, 1  ;;  %v717_v0 = vmov (!%p223_p2), 0   ;;  %v276_v1 = vld [vmem:[%s833_s2] sm:$0xff] (!%p223_p2)  ;;  %v277_v2 = vld [vmem:[%s833_s2 + $0x8] sm:$0xff] (!%p223_p2)  ;;  %vm306_vm0 = vcmask (!%p223_p2), 1041408   ;;  %vm302_vm1 = vcmask (!%p223_p2), 31744  }
   0x6   : > { %226 = sbr.rel (%p223_p2) target bundleno = 564 (0x234), region = 44  ;;  %345 = vmatprep.mubr.bf16.mxu0 (!%p223_p2), %v717_v0  ;;  %681 = vset.pattern.permute.xlu0 (!%p223_p2), %v717_v0  ;;  %v683_v6 = vld [vmem:[%s832_s1] sm:$0xff] (!%p223_p2)   ;;  %v718_v21 = vmov (!%p223_p2), 1.0   ;;  %vm473_vm6 = vcmask (!%p223_p2), 130048  }
   0x7   : > { %280 = vperm.xlu0 (!%p223_p2), %681, %v276_v1   ;;  %509 = vmatprep.mubr.bf16.mxu1 (!%p223_p2), %v717_v0  ;;  %v467_v7 = vld [vmem:[%s835_s4] sm:$0xf] (!%p223_p2) }
   0x8   : > { %682 = vset.pattern.permute.xlu1 (!%p223_p2), %v717_v0 }
   0x9   : > { %470 = vperm.xlu1 (!%p223_p2), %682, %v467_v7  }
   0xb   : > { %285 = vperm.xlu0 (!%p223_p2), %681, %v277_v2  }
   0xd   : > { %s839_s22 = smov (!%p257_p3, %s650_s22), 1 }
   0xe   : > { %s668_s27 = sshll.u32 %s839_s22, 2  ;;  %s669_s13 = sshll.u32 %s839_s22, 3 }
   0xf   : > { %s261_s30 = scalar_lea.vmem %s831_s0, %s668_s27  ;;  %s266_s16 = scalar_lea.vmem %s836_s5, %s669_s13 }
  0x10   : > { %v662_v3 = vld.sshfl [vmem:[%s261_s30] sm:$0x33 pattern:$0x76325410]  ;;  %s271_s19 = scalar_lea.vmem %s837_s6, %s669_s13 }
  0x11   : > { %v301_v4 = vcombine.high %v662_v3, %v662_v3  ;;  %v308_v5 = vsel %vm306_vm0, %v662_v3, 0 }
  0x13   : > { %663 = vmatprep.subr.msk.bf16.mxu0 %vm306_vm0, %v301_v4 }
  0x14   : > { %314 = vmatpush1.bf16.msra.mxu0 %v308_v5 }
  0x17   : > { %664 = vmatmul.mubr.msk.bf16.vlgmr.msra.gmra.mrb[0].mxu0 %vm302_vm1, %v683_v6 }
  0x86   : > { %v281_v8 = vpop.permute.xlu0 %280 }
  0x8a   : > { %v286_v12 = vpop.permute.xlu0 %285 }
  0xea   : > { %v347_v9 = vpop.f32.mrb[0].mxu0 }
  0xeb   : > { %v780_v10 = vadd.f32 %v347_v9, %v281_v8  ;;  %v349_v11 = vpop.f32.mrb[1].mxu0 }
  0xec   : > { %v782_v13 = vadd.f32 %v349_v11, %v281_v8  ;;  %v351_v14 = vpop.f32.mrb[2].mxu0 }
  0xed   : > { %v360_v15 = vmul.f32 0.70710677, %v780_v10  ;;  %v785_v16 = vadd.f32 %v351_v14, %v286_v12  ;;  %v353_v17 = vpop.f32.mrb[3].mxu0 }
  0xee   : > { %v361_v18 = vmul.f32 0.70710677, %v782_v13  ;;  %v788_v19 = vadd.f32 %v353_v17, %v286_v12 }
  0xef   : > { %vm364_vm2 = vcmp.lt.f32.partialorder %v360_v15, 0.0  ;;  %v362_v20 = vmul.f32 0.70710677, %v785_v16 }
  0xf0   : > { %v792_v22 = vsel %vm364_vm2, -1.0, %v718_v21  ;;  %vm365_vm3 = vcmp.lt.f32.partialorder %v361_v18, 0.0  ;;  %v363_v23 = vmul.f32 0.70710677, %v788_v19 }
  0xf1   : > { %v372_v24 = vmul.f32 %v792_v22, %v360_v15  ;;  %v797_v25 = vsel %vm365_vm3, -1.0, %v718_v21  ;;  %vm366_vm4 = vcmp.lt.f32.partialorder %v362_v20, 0.0 }
  0xf2   : > { %v373_v26 = vmul.f32 %v797_v25, %v361_v18  ;;  %v801_v27 = vsel %vm366_vm4, -1.0, %v718_v21  ;;  %vm367_vm5 = vcmp.lt.f32.partialorder %v363_v23, 0.0 }
  0xf3   : > { %v376_v28 = vmul.f32 0.3275911, %v372_v24  ;;  %v374_v29 = vmul.f32 %v801_v27, %v362_v20  ;;  %v805_v30 = vsel %vm367_vm5, -1.0, %v718_v21  ;;  %v428_v39 = vsub.f32 0.0, %v372_v24 }
  0xf4   : > { %v377_v31 = vmul.f32 0.3275911, %v373_v26  ;;  %v375_v32 = vmul.f32 %v805_v30, %v363_v23  ;;  %v429_v40 = vsub.f32 0.0, %v373_v26 }
  0xf5   : > { %v380_v33 = vadd.f32 1.0, %v376_v28  ;;  %v378_v34 = vmul.f32 0.3275911, %v374_v29  ;;  %v432_v42 = vmul.f32 %v428_v39, %v372_v24  ;;  %v430_v43 = vsub.f32 0.0, %v374_v29 }
  0xf6   : > { %v381_v35 = vadd.f32 1.0, %v377_v31  ;;  %v379_v36 = vmul.f32 0.3275911, %v375_v32  ;;  %v433_v45 = vmul.f32 %v429_v40, %v373_v26  ;;  %v431_v47 = vsub.f32 0.0, %v375_v32 }
  0xf7   : > { %685 = vrcp.f32 %v380_v33  ;;  %v382_v37 = vadd.f32 1.0, %v378_v34  ;;  %v436_v51 = vmul.f32 1.442695, %v432_v42  ;;  %v434_v52 = vmul.f32 %v430_v43, %v374_v29 }
  0xf8   : > { %687 = vrcp.f32 %v381_v35  ;;  %v383_v38 = vadd.f32 1.0, %v379_v36  ;;  %v438_v54 = vmul.f32 1.442695, %v433_v45  ;;  %v435_v58 = vmul.f32 %v431_v47, %v375_v32 }
  0xf9   : > { %689 = vrcp.f32 %v382_v37  ;;  %v440_v63 = vmul.f32 1.442695, %v434_v52 }
  0xfa   : > { %691 = vrcp.f32 %v383_v38  ;;  %v442_v4 = vmul.f32 1.442695, %v435_v58 }
  0xfb   : > { %693 = vpow2.f32 %v436_v51 }
  0xfc   : > { %695 = vpow2.f32 %v438_v54 }
  0xfd   : > { %697 = vpow2.f32 %v440_v63 }
  0xfe   : > { %699 = vpow2.f32 %v442_v4 }
 0x101   : > { %v686_v41 = vpop.eup %685 }
 0x102   : > { %v688_v44 = vpop.eup %687  ;;  %v392_v46 = vmul.f32 1.0614054, %v686_v41 }
 0x103   : > { %v393_v48 = vmul.f32 1.0614054, %v688_v44  ;;  %v690_v50 = vpop.eup %689 }
 0x104   : > { %v396_v49 = vadd.f32 -1.4531521, %v392_v46  ;;  %v394_v55 = vmul.f32 1.0614054, %v690_v50  ;;  %v692_v57 = vpop.eup %691 }
 0x105   : > { %v397_v53 = vadd.f32 -1.4531521, %v393_v48  ;;  %v395_v60 = vmul.f32 1.0614054, %v692_v57  ;;  %v694_v29 = vpop.eup %693 }
 0x106   : > { %v400_v56 = vmul.f32 %v686_v41, %v396_v49  ;;  %v398_v61 = vadd.f32 -1.4531521, %v394_v55  ;;  %v696_v32 = vpop.eup %695 }
 0x107   : > { %v401_v59 = vmul.f32 %v688_v44, %v397_v53  ;;  %v399_v1 = vadd.f32 -1.4531521, %v395_v60  ;;  %v698_v40 = vpop.eup %697  ;;  %v356_v53 = vmul.f32 0.5, %v780_v10  ;;  %v464_v10 = vld [vmem:[%s834_s3] sm:$0x3] }
 0x108   : > { %v404_v62 = vadd.f32 1.4214138, %v400_v56  ;;  %v402_v2 = vmul.f32 %v690_v50, %v398_v61  ;;  %v700_v47 = vpop.eup %699 }
 0x109   : > { %v405_v0 = vadd.f32 1.4214138, %v401_v59  ;;  %v403_v6 = vmul.f32 %v692_v57, %v399_v1 }
 0x10a   : > { %v408_v3 = vmul.f32 %v686_v41, %v404_v62  ;;  %v406_v7 = vadd.f32 1.4214138, %v402_v2 }
 0x10b   : > { %v409_v5 = vmul.f32 %v688_v44, %v405_v0  ;;  %v407_v11 = vadd.f32 1.4214138, %v403_v6 }
 0x10c   : > { %v412_v8 = vadd.f32 -0.28449672, %v408_v3  ;;  %v410_v12 = vmul.f32 %v690_v50, %v406_v7 }
 0x10d   : > { %v413_v9 = vadd.f32 -0.28449672, %v409_v5  ;;  %v411_v17 = vmul.f32 %v692_v57, %v407_v11 }
 0x10e   : > { %v416_v14 = vmul.f32 %v686_v41, %v412_v8  ;;  %v414_v18 = vadd.f32 -0.28449672, %v410_v12 }
 0x10f   : > { %v417_v15 = vmul.f32 %v688_v44, %v413_v9  ;;  %v415_v24 = vadd.f32 -0.28449672, %v411_v17 }
 0x110   : > { %v420_v20 = vadd.f32 0.2548296, %v416_v14  ;;  %v418_v26 = vmul.f32 %v690_v50, %v414_v18 }
 0x111   : > { %v421_v23 = vadd.f32 0.2548296, %v417_v15  ;;  %v419_v33 = vmul.f32 %v692_v57, %v415_v24 }
 0x112   : > { %v424_v28 = vmul.f32 %v686_v41, %v420_v20  ;;  %v422_v34 = vadd.f32 0.2548296, %v418_v26 }
 0x113   : > { %v425_v31 = vmul.f32 %v688_v44, %v421_v23  ;;  %v423_v37 = vadd.f32 0.2548296, %v419_v33 }
 0x114   : > { %v444_v35 = vmul.f32 %v694_v29, %v424_v28  ;;  %v426_v38 = vmul.f32 %v690_v50, %v422_v34  ;;  %v358_v50 = vmul.f32 0.5, %v785_v16  ;;  %v471_v16 = vpop.permute.xlu1 %470 }
 0x115   : > { %v445_v36 = vmul.f32 %v696_v32, %v425_v31  ;;  %v427_v43 = vmul.f32 %v692_v57, %v423_v37  ;;  %v357_v57 = vmul.f32 0.5, %v782_v13 }
 0x116   : > { %v448_v39 = vsub.f32 1.0, %v444_v35  ;;  %v446_v45 = vmul.f32 %v698_v40, %v426_v38 }
 0x117   : > { %v449_v42 = vsub.f32 1.0, %v445_v36  ;;  %v447_v48 = vmul.f32 %v700_v47, %v427_v43 }
 0x118   : > { %v452_v46 = vmul.f32 %v448_v39, %v792_v22  ;;  %v450_v49 = vsub.f32 1.0, %v446_v45  ;;  %v359_v22 = vmul.f32 0.5, %v788_v19 }
 0x119   : > { %v453_v41 = vmul.f32 %v449_v42, %v797_v25  ;;  %v451_v44 = vsub.f32 1.0, %v447_v48 }
 0x11a   : > { %v454_v51 = vmul.f32 %v450_v49, %v801_v27  ;;  %v456_v52 = vadd.f32 1.0, %v452_v46 }
 0x11b   : > { %v455_v54 = vmul.f32 %v451_v44, %v805_v30  ;;  %v457_v55 = vadd.f32 1.0, %v453_v41 }
 0x11c   : > { %v458_v56 = vadd.f32 1.0, %v454_v51  ;;  %v460_v59 = vmul.f32 %v456_v52, %v356_v53 }
 0x11d   : > { %v459_v58 = vadd.f32 1.0, %v455_v54  ;;  %v461_v60 = vmul.f32 %v457_v55, %v357_v57 }
 0x11e   : > { %v462_v25 = vmul.f32 %v458_v56, %v358_v50  ;;  %v572_v50 = vld [vmem:[%s266_s16] sm:$0xff] }
 0x11f   : > { %v463_v61 = vmul.f32 %v459_v58, %v359_v22  ;;  %v574_v58 = vcombine.high %v572_v50, %v572_v50 }
 0x120   : > { %v465_v62 = vpack.c.bf16 %v462_v25, %v460_v59 }
 0x121   : > { %v466_v27 = vpack.c.bf16 %v463_v61, %v461_v60 }
 0x123   : > { %477 = vmatprep.subr.bf16.mxu1 %v466_v27 }
 0x124   : > { %478 = vmatpush1.bf16.msra.mxu1 %v465_v62 }
 0x127   : > { %665 = vmatmul.mubr.msk.bf16.vlgmr.msra.gmra.mrb[0].mxu1 %vm473_vm6, %v464_v10 }
 0x1fa   : > { %v511_v30 = vpop.f32.mrb[0].mxu1 }
 0x1fb   : > { %v512_v13 = vadd.f32 %v511_v30, %v471_v16  ;;  %v513_v63 = vpop.f32.mrb[1].mxu1 }
 0x1fc   : > { %v514_v19 = vadd.f32 %v513_v63, %v471_v16  ;;  %v515_v0 = vpop.f32.mrb[2].mxu1 }
 0x1fd   : > { %v520_v1 = vmul.f32 0.70710677, %v512_v13  ;;  %v516_v2 = vpop.f32.mrb[3].mxu1  ;;  %v518_v55 = vmul.f32 0.5, %v512_v13 }
 0x1fe   : > { %v521_v3 = vmul.f32 0.70710677, %v514_v19  ;;  %v519_v57 = vmul.f32 0.5, %v514_v19 }
 0x1ff   : > { %vm522_vm7 = vcmp.lt.f32.partialorder %v520_v1, 0.0 }
 0x200   : > { %v524_v4 = vsel %vm522_vm7, -1.0, %v718_v21  ;;  %vm523_vm8 = vcmp.lt.f32.partialorder %v521_v3, 0.0 }
 0x201   : > { %v526_v5 = vmul.f32 %v524_v4, %v520_v1  ;;  %v525_v6 = vsel %vm523_vm8, -1.0, %v718_v21 }
 0x202   : > { %v527_v7 = vmul.f32 %v525_v6, %v521_v3 }
 0x203   : > { %v528_v8 = vmul.f32 0.3275911, %v526_v5  ;;  %v554_v14 = vsub.f32 0.0, %v526_v5 }
 0x204   : > { %v529_v9 = vmul.f32 0.3275911, %v527_v7  ;;  %v555_v15 = vsub.f32 0.0, %v527_v7 }
 0x205   : > { %v530_v11 = vadd.f32 1.0, %v528_v8  ;;  %v556_v18 = vmul.f32 %v554_v14, %v526_v5 }
 0x206   : > { %v531_v12 = vadd.f32 1.0, %v529_v9  ;;  %v557_v24 = vmul.f32 %v555_v15, %v527_v7 }
 0x207   : > { %701 = vrcp.f32 %v530_v11  ;;  %v558_v29 = vmul.f32 1.442695, %v556_v18 }
 0x208   : > { %703 = vrcp.f32 %v531_v12  ;;  %v560_v32 = vmul.f32 1.442695, %v557_v24 }
 0x209   : > { %705 = vpow2.f32 %v558_v29 }
 0x20a   : > { %707 = vpow2.f32 %v560_v32 }
 0x211   : > { %v702_v17 = vpop.eup %701 }
 0x212   : > { %v704_v20 = vpop.eup %703  ;;  %v536_v23 = vmul.f32 1.0614054, %v702_v17 }
 0x213   : > { %v537_v26 = vmul.f32 1.0614054, %v704_v20  ;;  %v706_v47 = vpop.eup %705 }
 0x214   : > { %v538_v28 = vadd.f32 -1.4531521, %v536_v23  ;;  %v708_v41 = vpop.eup %707 }
 0x215   : > { %v539_v31 = vadd.f32 -1.4531521, %v537_v26 }
 0x216   : > { %v540_v21 = vmul.f32 %v702_v17, %v538_v28 }
 0x217   : > { %v541_v33 = vmul.f32 %v704_v20, %v539_v31 }
 0x218   : > { %v542_v34 = vadd.f32 1.4214138, %v540_v21 }
 0x219   : > { %v543_v35 = vadd.f32 1.4214138, %v541_v33 }
 0x21a   : > { %v544_v36 = vmul.f32 %v702_v17, %v542_v34 }
 0x21b   : > { %v545_v37 = vmul.f32 %v704_v20, %v543_v35 }
 0x21c   : > { %v546_v38 = vadd.f32 -0.28449672, %v544_v36 }
 0x21d   : > { %v547_v39 = vadd.f32 -0.28449672, %v545_v37 }
 0x21e   : > { %v548_v40 = vmul.f32 %v702_v17, %v546_v38 }
 0x21f   : > { %v549_v42 = vmul.f32 %v704_v20, %v547_v39 }
 0x220   : > { %v550_v43 = vadd.f32 0.2548296, %v548_v40 }
 0x221   : > { %v551_v45 = vadd.f32 0.2548296, %v549_v42 }
 0x222   : > { %v552_v46 = vmul.f32 %v702_v17, %v550_v43 }
 0x223   : > { %v553_v48 = vmul.f32 %v704_v20, %v551_v45 }
 0x224   : > { %v562_v49 = vmul.f32 %v706_v47, %v552_v46 }
 0x225   : > { %v563_v44 = vmul.f32 %v708_v41, %v553_v48 }
 0x226   : > { %v564_v51 = vsub.f32 1.0, %v562_v49 }
 0x227   : > { %v565_v52 = vsub.f32 1.0, %v563_v44 }
 0x228   : > { %v566_v53 = vmul.f32 %v564_v51, %v524_v4 }
 0x229   : > { %v567_v54 = vmul.f32 %v565_v52, %v525_v6 }
 0x22a   : > { %v568_v56 = vadd.f32 1.0, %v566_v53 }
 0x22b   : > { %v569_v22 = vadd.f32 1.0, %v567_v54 }
 0x22c   : > { %v570_v59 = vmul.f32 %v568_v56, %v518_v55 }
 0x22d   : > { %v571_v25 = vmul.f32 %v569_v22, %v519_v57 }
 0x22e   : > { %v576_v60 = vadd.f32 %v572_v50, %v570_v59 }
 0x22f   : > { %v577_v61 = vadd.f32 %v574_v58, %v571_v25 }
 0x231   : > { %v580_v62 = vcombine.low %v576_v60, %v577_v61 }
 0x233   : > { %582 = vst [vmem:[%s271_s19] sm:$0xff] %v580_v62 }
 0x234 PF: > { %s16_s21 = sadd.s32 1, %s715_s21  }
 0x235   : > { %p13_p4 = scmp.ge.s32.totalorder %s16_s21, 4  }
 0x237   :  { %15 = sbr.rel (!%p13_p4) target bundleno = 1 (0x1), region = 77 }

</bundles_post_ra>
